<compile_context>
chip_gen: v7x
topology: tpu7x:2x2x1
jax: 0.10.0
libtpu: 0.0.40
codegen_flags: <defaults>
</compile_context>

<pallas_src>
import math

import jax
import jax.numpy as jnp
from jax.experimental import pallas as pl
from jax.experimental.pallas import tpu as pltpu


def _gather_rows_kernel(idx_ref, w_hbm, o_ref, sem):
    """Gather TN rows of the HBM table into the (TN, E) output tile.

    idx_ref : SMEM int32[N_pad]  flattened, clamped token ids (scalar prefetch)
    w_hbm   : HBM  f32[V, E]     embedding table (no auto-DMA)
    o_ref   : VMEM f32[TN, E]    output tile for this grid step
    sem     : DMA semaphores, one per in-flight row copy
    """
    t = pl.program_id(0)
    tn = o_ref.shape[0]
    base = t * tn
    copies = []
    # Static unroll: all TN row DMAs are issued before any wait, so they are
    # all in flight concurrently and overlap with each other.
    for j in range(tn):
        row = idx_ref[base + j]
        cp = pltpu.make_async_copy(
            w_hbm.at[pl.ds(row, 1), :],   # (1, E) row in HBM
            o_ref.at[pl.ds(j, 1), :],     # (1, E) row of the output tile
            sem.at[j],
        )
        cp.start()
        copies.append(cp)
    for cp in copies:
        cp.wait()


def meta_embedding_forward(x, weight, *, tokens_per_tile=None):
    """Pallas equivalent of F.embedding(x, weight).

    x:      integer indices of any shape, values in [0, num_embeddings)
    weight: (num_embeddings, embedding_dim) float array
    returns x.shape + (embedding_dim,) array of weight rows
    """
    orig_shape = x.shape
    V, E = weight.shape
    N = math.prod(orig_shape) if orig_shape else 1
    idx = x.reshape(N).astype(jnp.int32)
    # The DMA gather reads whatever row the index points at, so keep it in
    # bounds.  TODO(synk): PyTorch F.embedding raises on out-of-range indices;
    # here they are clamped instead (no clean in-kernel error path on TPU).
    idx = jnp.clip(idx, 0, V - 1)

    if tokens_per_tile is None:
        # Multiple of 8 (sublane), capped so the unrolled DMA batch stays small.
        tokens_per_tile = min(128, pl.next_power_of_2(max(N, 8)))
    tn = int(tokens_per_tile)
    n_pad = pl.cdiv(N, tn) * tn
    if n_pad != N:
        # Padded slots gather row 0 and are sliced off below.
        idx = jnp.concatenate([idx, jnp.zeros((n_pad - N,), jnp.int32)])

    grid_spec = pltpu.PrefetchScalarGridSpec(
        num_scalar_prefetch=1,                          # idx -> SMEM before grid
        grid=(n_pad // tn,),
        in_specs=[pl.BlockSpec(memory_space=pl.ANY)],   # table stays in HBM
        out_specs=pl.BlockSpec((tn, E), lambda t, idx_ref: (t, 0)),
        scratch_shapes=[pltpu.SemaphoreType.DMA((tn,))],
    )

    out = pl.pallas_call(
        _gather_rows_kernel,
        out_shape=jax.ShapeDtypeStruct((n_pad, E), weight.dtype),
        grid_spec=grid_spec,
        compiler_params=pltpu.CompilerParams(
            dimension_semantics=("parallel",),  # token tiles are independent
        ),
    )(idx, weight)

    out = out[:N]
    return out.reshape(*orig_shape, E)


class MetaEmbedding:
    """JAX/Pallas port of the PyTorch MetaEmbedding module (forward pass)."""

    def __init__(self, num_embeddings, embedding_dim, padding_idx, *, key):
        self.num_embeddings = num_embeddings
        self.embedding_dim = embedding_dim
        if padding_idx is not None:
            if padding_idx > 0:
                assert padding_idx < num_embeddings
            elif padding_idx < 0:
                assert padding_idx >= -num_embeddings
                padding_idx = num_embeddings + padding_idx
        self.padding_idx = padding_idx
        # reset_parameters(): normal(0, 1) init, padding row zeroed.
        w = jax.random.normal(key, (num_embeddings, embedding_dim), dtype=jnp.float32)
        if padding_idx is not None:
            w = w.at[padding_idx].set(0.0)
        self.weight = w

    def __call__(self, x, params=None):
        if params is not None:
            weight = params["weight"]
            assert weight.shape == self.weight.shape
        else:
            weight = self.weight
        return meta_embedding_forward(x, weight)


if __name__ == "__main__":
    key = jax.random.PRNGKey(0)
    k_w, k_x = jax.random.split(key)

    num_embeddings = 32    # vocab size
    embedding_dim = 128    # embedding width (lane-aligned)
    padding_idx = 0
    batch, seq = 2, 8

    emb = MetaEmbedding(num_embeddings, embedding_dim, padding_idx, key=k_w)
    x = jax.random.randint(k_x, (batch, seq), 0, num_embeddings, dtype=jnp.int32)

    out = emb(x)                       # Pallas DMA-gather kernel path
    out = jax.block_until_ready(out)

    # reference check: plain JAX gather (the DMA gather is a byte copy -> exact)
    ref = jnp.take(emb.weight, x, axis=0)
    assert out.shape == (batch, seq, embedding_dim)
    assert bool(jnp.array_equal(out, ref)), "mismatch vs reference embedding"

    print("KERNEL_OK")
</pallas_src>

<mosaic_0001>
module attributes {stable_mosaic.version = 11 : i64} {
  func.func @_gather_rows_kernel(%arg0: i32, %arg1: memref<16xi32, #tpu.memory_space<smem>>, %arg2: memref<32x128xf32, #tpu.memory_space<any>>, %arg3: memref<16x128xf32, #tpu.memory_space<vmem>>, %arg4: memref<16x!tpu.dma_semaphore, #tpu.memory_space<semaphore_mem>>) attributes {dimension_semantics = [#tpu.dimension_semantics<parallel>], iteration_bounds = array<i64: 1>, scalar_prefetch = 1 : i64, scratch_operands = 1 : i64, tpu.core_type = #tpu.core_type<tc>, window_params = [{}, {transform_indices = @transform_1, window_bounds = array<i64: 16, 128>}]} {
    %c16_i32 = arith.constant 16 : i32
    %0 = arith.muli %arg0, %c16_i32 : i32
    %c0_i32 = arith.constant 0 : i32
    %1 = arith.addi %0, %c0_i32 : i32
    %2 = arith.index_cast %1 : i32 to index
    %3 = memref.load %arg1[%2] : memref<16xi32, #tpu.memory_space<smem>>
    %c0_i32_0 = arith.constant 0 : i32
    %c0_i32_1 = arith.constant 0 : i32
    %4 = tpu.memref_slice %arg2[%3, %c0_i32_1] : memref<32x128xf32, #tpu.memory_space<any>> -> memref<1x128xf32, #tpu.memory_space<any>>
    %c0_i32_2 = arith.constant 0 : i32
    %c0_i32_3 = arith.constant 0 : i32
    %5 = tpu.memref_slice %arg3[%c0_i32_2, %c0_i32_3] : memref<16x128xf32, #tpu.memory_space<vmem>> -> memref<1x128xf32, #tpu.memory_space<vmem>>
    %6 = tpu.memref_slice %arg4[%c0_i32_0] : memref<16x!tpu.dma_semaphore, #tpu.memory_space<semaphore_mem>> -> memref<1x!tpu.dma_semaphore, #tpu.memory_space<semaphore_mem>>
    %7 = tpu.memref_squeeze %6 : memref<1x!tpu.dma_semaphore, #tpu.memory_space<semaphore_mem>> -> memref<!tpu.dma_semaphore, #tpu.memory_space<semaphore_mem>>
    tpu.enqueue_dma source(%4 : memref<1x128xf32, #tpu.memory_space<any>>) target(%5 : memref<1x128xf32, #tpu.memory_space<vmem>>) target_semaphore(%7 : memref<!tpu.dma_semaphore, #tpu.memory_space<semaphore_mem>>)
    %c1_i32 = arith.constant 1 : i32
    %8 = arith.addi %0, %c1_i32 : i32
    %9 = arith.index_cast %8 : i32 to index
    %10 = memref.load %arg1[%9] : memref<16xi32, #tpu.memory_space<smem>>
    %c1_i32_4 = arith.constant 1 : i32
    %c0_i32_5 = arith.constant 0 : i32
    %11 = tpu.memref_slice %arg2[%10, %c0_i32_5] : memref<32x128xf32, #tpu.memory_space<any>> -> memref<1x128xf32, #tpu.memory_space<any>>
    %c1_i32_6 = arith.constant 1 : i32
    %c0_i32_7 = arith.constant 0 : i32
    %12 = tpu.memref_slice %arg3[%c1_i32_6, %c0_i32_7] : memref<16x128xf32, #tpu.memory_space<vmem>> -> memref<1x128xf32, #tpu.memory_space<vmem>>
    %13 = tpu.memref_slice %arg4[%c1_i32_4] : memref<16x!tpu.dma_semaphore, #tpu.memory_space<semaphore_mem>> -> memref<1x!tpu.dma_semaphore, #tpu.memory_space<semaphore_mem>>
    %14 = tpu.memref_squeeze %13 : memref<1x!tpu.dma_semaphore, #tpu.memory_space<semaphore_mem>> -> memref<!tpu.dma_semaphore, #tpu.memory_space<semaphore_mem>>
    tpu.enqueue_dma source(%11 : memref<1x128xf32, #tpu.memory_space<any>>) target(%12 : memref<1x128xf32, #tpu.memory_space<vmem>>) target_semaphore(%14 : memref<!tpu.dma_semaphore, #tpu.memory_space<semaphore_mem>>)
    %c2_i32 = arith.constant 2 : i32
    %15 = arith.addi %0, %c2_i32 : i32
    %16 = arith.index_cast %15 : i32 to index
    %17 = memref.load %arg1[%16] : memref<16xi32, #tpu.memory_space<smem>>
    %c2_i32_8 = arith.constant 2 : i32
    %c0_i32_9 = arith.constant 0 : i32
    %18 = tpu.memref_slice %arg2[%17, %c0_i32_9] : memref<32x128xf32, #tpu.memory_space<any>> -> memref<1x128xf32, #tpu.memory_space<any>>
    %c2_i32_10 = arith.constant 2 : i32
    %c0_i32_11 = arith.constant 0 : i32
    %19 = tpu.memref_slice %arg3[%c2_i32_10, %c0_i32_11] : memref<16x128xf32, #tpu.memory_space<vmem>> -> memref<1x128xf32, #tpu.memory_space<vmem>>
    %20 = tpu.memref_slice %arg4[%c2_i32_8] : memref<16x!tpu.dma_semaphore, #tpu.memory_space<semaphore_mem>> -> memref<1x!tpu.dma_semaphore, #tpu.memory_space<semaphore_mem>>
    %21 = tpu.memref_squeeze %20 : memref<1x!tpu.dma_semaphore, #tpu.memory_space<semaphore_mem>> -> memref<!tpu.dma_semaphore, #tpu.memory_space<semaphore_mem>>
    tpu.enqueue_dma source(%18 : memref<1x128xf32, #tpu.memory_space<any>>) target(%19 : memref<1x128xf32, #tpu.memory_space<vmem>>) target_semaphore(%21 : memref<!tpu.dma_semaphore, #tpu.memory_space<semaphore_mem>>)
    %c3_i32 = arith.constant 3 : i32
    %22 = arith.addi %0, %c3_i32 : i32
    %23 = arith.index_cast %22 : i32 to index
    %24 = memref.load %arg1[%23] : memref<16xi32, #tpu.memory_space<smem>>
    %c3_i32_12 = arith.constant 3 : i32
    %c0_i32_13 = arith.constant 0 : i32
    %25 = tpu.memref_slice %arg2[%24, %c0_i32_13] : memref<32x128xf32, #tpu.memory_space<any>> -> memref<1x128xf32, #tpu.memory_space<any>>
    %c3_i32_14 = arith.constant 3 : i32
    %c0_i32_15 = arith.constant 0 : i32
    %26 = tpu.memref_slice %arg3[%c3_i32_14, %c0_i32_15] : memref<16x128xf32, #tpu.memory_space<vmem>> -> memref<1x128xf32, #tpu.memory_space<vmem>>
    %27 = tpu.memref_slice %arg4[%c3_i32_12] : memref<16x!tpu.dma_semaphore, #tpu.memory_space<semaphore_mem>> -> memref<1x!tpu.dma_semaphore, #tpu.memory_space<semaphore_mem>>
    %28 = tpu.memref_squeeze %27 : memref<1x!tpu.dma_semaphore, #tpu.memory_space<semaphore_mem>> -> memref<!tpu.dma_semaphore, #tpu.memory_space<semaphore_mem>>
    tpu.enqueue_dma source(%25 : memref<1x128xf32, #tpu.memory_space<any>>) target(%26 : memref<1x128xf32, #tpu.memory_space<vmem>>) target_semaphore(%28 : memref<!tpu.dma_semaphore, #tpu.memory_space<semaphore_mem>>)
    %c4_i32 = arith.constant 4 : i32
    %29 = arith.addi %0, %c4_i32 : i32
    %30 = arith.index_cast %29 : i32 to index
    %31 = memref.load %arg1[%30] : memref<16xi32, #tpu.memory_space<smem>>
    %c4_i32_16 = arith.constant 4 : i32
    %c0_i32_17 = arith.constant 0 : i32
    %32 = tpu.memref_slice %arg2[%31, %c0_i32_17] : memref<32x128xf32, #tpu.memory_space<any>> -> memref<1x128xf32, #tpu.memory_space<any>>
    %c4_i32_18 = arith.constant 4 : i32
    %c0_i32_19 = arith.constant 0 : i32
    %33 = tpu.memref_slice %arg3[%c4_i32_18, %c0_i32_19] : memref<16x128xf32, #tpu.memory_space<vmem>> -> memref<1x128xf32, #tpu.memory_space<vmem>>
    %34 = tpu.memref_slice %arg4[%c4_i32_16] : memref<16x!tpu.dma_semaphore, #tpu.memory_space<semaphore_mem>> -> memref<1x!tpu.dma_semaphore, #tpu.memory_space<semaphore_mem>>
    %35 = tpu.memref_squeeze %34 : memref<1x!tpu.dma_semaphore, #tpu.memory_space<semaphore_mem>> -> memref<!tpu.dma_semaphore, #tpu.memory_space<semaphore_mem>>
    tpu.enqueue_dma source(%32 : memref<1x128xf32, #tpu.memory_space<any>>) target(%33 : memref<1x128xf32, #tpu.memory_space<vmem>>) target_semaphore(%35 : memref<!tpu.dma_semaphore, #tpu.memory_space<semaphore_mem>>)
    %c5_i32 = arith.constant 5 : i32
    %36 = arith.addi %0, %c5_i32 : i32
    %37 = arith.index_cast %36 : i32 to index
    %38 = memref.load %arg1[%37] : memref<16xi32, #tpu.memory_space<smem>>
    %c5_i32_20 = arith.constant 5 : i32
    %c0_i32_21 = arith.constant 0 : i32
    %39 = tpu.memref_slice %arg2[%38, %c0_i32_21] : memref<32x128xf32, #tpu.memory_space<any>> -> memref<1x128xf32, #tpu.memory_space<any>>
    %c5_i32_22 = arith.constant 5 : i32
    %c0_i32_23 = arith.constant 0 : i32
    %40 = tpu.memref_slice %arg3[%c5_i32_22, %c0_i32_23] : memref<16x128xf32, #tpu.memory_space<vmem>> -> memref<1x128xf32, #tpu.memory_space<vmem>>
    %41 = tpu.memref_slice %arg4[%c5_i32_20] : memref<16x!tpu.dma_semaphore, #tpu.memory_space<semaphore_mem>> -> memref<1x!tpu.dma_semaphore, #tpu.memory_space<semaphore_mem>>
    %42 = tpu.memref_squeeze %41 : memref<1x!tpu.dma_semaphore, #tpu.memory_space<semaphore_mem>> -> memref<!tpu.dma_semaphore, #tpu.memory_space<semaphore_mem>>
    tpu.enqueue_dma source(%39 : memref<1x128xf32, #tpu.memory_space<any>>) target(%40 : memref<1x128xf32, #tpu.memory_space<vmem>>) target_semaphore(%42 : memref<!tpu.dma_semaphore, #tpu.memory_space<semaphore_mem>>)
    %c6_i32 = arith.constant 6 : i32
    %43 = arith.addi %0, %c6_i32 : i32
    %44 = arith.index_cast %43 : i32 to index
    %45 = memref.load %arg1[%44] : memref<16xi32, #tpu.memory_space<smem>>
    %c6_i32_24 = arith.constant 6 : i32
    %c0_i32_25 = arith.constant 0 : i32
    %46 = tpu.memref_slice %arg2[%45, %c0_i32_25] : memref<32x128xf32, #tpu.memory_space<any>> -> memref<1x128xf32, #tpu.memory_space<any>>
    %c6_i32_26 = arith.constant 6 : i32
    %c0_i32_27 = arith.constant 0 : i32
    %47 = tpu.memref_slice %arg3[%c6_i32_26, %c0_i32_27] : memref<16x128xf32, #tpu.memory_space<vmem>> -> memref<1x128xf32, #tpu.memory_space<vmem>>
    %48 = tpu.memref_slice %arg4[%c6_i32_24] : memref<16x!tpu.dma_semaphore, #tpu.memory_space<semaphore_mem>> -> memref<1x!tpu.dma_semaphore, #tpu.memory_space<semaphore_mem>>
    %49 = tpu.memref_squeeze %48 : memref<1x!tpu.dma_semaphore, #tpu.memory_space<semaphore_mem>> -> memref<!tpu.dma_semaphore, #tpu.memory_space<semaphore_mem>>
    tpu.enqueue_dma source(%46 : memref<1x128xf32, #tpu.memory_space<any>>) target(%47 : memref<1x128xf32, #tpu.memory_space<vmem>>) target_semaphore(%49 : memref<!tpu.dma_semaphore, #tpu.memory_space<semaphore_mem>>)
    %c7_i32 = arith.constant 7 : i32
    %50 = arith.addi %0, %c7_i32 : i32
    %51 = arith.index_cast %50 : i32 to index
    %52 = memref.load %arg1[%51] : memref<16xi32, #tpu.memory_space<smem>>
    %c7_i32_28 = arith.constant 7 : i32
    %c0_i32_29 = arith.constant 0 : i32
    %53 = tpu.memref_slice %arg2[%52, %c0_i32_29] : memref<32x128xf32, #tpu.memory_space<any>> -> memref<1x128xf32, #tpu.memory_space<any>>
    %c7_i32_30 = arith.constant 7 : i32
    %c0_i32_31 = arith.constant 0 : i32
    %54 = tpu.memref_slice %arg3[%c7_i32_30, %c0_i32_31] : memref<16x128xf32, #tpu.memory_space<vmem>> -> memref<1x128xf32, #tpu.memory_space<vmem>>
    %55 = tpu.memref_slice %arg4[%c7_i32_28] : memref<16x!tpu.dma_semaphore, #tpu.memory_space<semaphore_mem>> -> memref<1x!tpu.dma_semaphore, #tpu.memory_space<semaphore_mem>>
    %56 = tpu.memref_squeeze %55 : memref<1x!tpu.dma_semaphore, #tpu.memory_space<semaphore_mem>> -> memref<!tpu.dma_semaphore, #tpu.memory_space<semaphore_mem>>
    tpu.enqueue_dma source(%53 : memref<1x128xf32, #tpu.memory_space<any>>) target(%54 : memref<1x128xf32, #tpu.memory_space<vmem>>) target_semaphore(%56 : memref<!tpu.dma_semaphore, #tpu.memory_space<semaphore_mem>>)
    %c8_i32 = arith.constant 8 : i32
    %57 = arith.addi %0, %c8_i32 : i32
    %58 = arith.index_cast %57 : i32 to index
    %59 = memref.load %arg1[%58] : memref<16xi32, #tpu.memory_space<smem>>
    %c8_i32_32 = arith.constant 8 : i32
    %c0_i32_33 = arith.constant 0 : i32
    %60 = tpu.memref_slice %arg2[%59, %c0_i32_33] : memref<32x128xf32, #tpu.memory_space<any>> -> memref<1x128xf32, #tpu.memory_space<any>>
    %c8_i32_34 = arith.constant 8 : i32
    %c0_i32_35 = arith.constant 0 : i32
    %61 = tpu.memref_slice %arg3[%c8_i32_34, %c0_i32_35] : memref<16x128xf32, #tpu.memory_space<vmem>> -> memref<1x128xf32, #tpu.memory_space<vmem>>
    %62 = tpu.memref_slice %arg4[%c8_i32_32] : memref<16x!tpu.dma_semaphore, #tpu.memory_space<semaphore_mem>> -> memref<1x!tpu.dma_semaphore, #tpu.memory_space<semaphore_mem>>
    %63 = tpu.memref_squeeze %62 : memref<1x!tpu.dma_semaphore, #tpu.memory_space<semaphore_mem>> -> memref<!tpu.dma_semaphore, #tpu.memory_space<semaphore_mem>>
    tpu.enqueue_dma source(%60 : memref<1x128xf32, #tpu.memory_space<any>>) target(%61 : memref<1x128xf32, #tpu.memory_space<vmem>>) target_semaphore(%63 : memref<!tpu.dma_semaphore, #tpu.memory_space<semaphore_mem>>)
    %c9_i32 = arith.constant 9 : i32
    %64 = arith.addi %0, %c9_i32 : i32
    %65 = arith.index_cast %64 : i32 to index
    %66 = memref.load %arg1[%65] : memref<16xi32, #tpu.memory_space<smem>>
    %c9_i32_36 = arith.constant 9 : i32
    %c0_i32_37 = arith.constant 0 : i32
    %67 = tpu.memref_slice %arg2[%66, %c0_i32_37] : memref<32x128xf32, #tpu.memory_space<any>> -> memref<1x128xf32, #tpu.memory_space<any>>
    %c9_i32_38 = arith.constant 9 : i32
    %c0_i32_39 = arith.constant 0 : i32
    %68 = tpu.memref_slice %arg3[%c9_i32_38, %c0_i32_39] : memref<16x128xf32, #tpu.memory_space<vmem>> -> memref<1x128xf32, #tpu.memory_space<vmem>>
    %69 = tpu.memref_slice %arg4[%c9_i32_36] : memref<16x!tpu.dma_semaphore, #tpu.memory_space<semaphore_mem>> -> memref<1x!tpu.dma_semaphore, #tpu.memory_space<semaphore_mem>>
    %70 = tpu.memref_squeeze %69 : memref<1x!tpu.dma_semaphore, #tpu.memory_space<semaphore_mem>> -> memref<!tpu.dma_semaphore, #tpu.memory_space<semaphore_mem>>
    tpu.enqueue_dma source(%67 : memref<1x128xf32, #tpu.memory_space<any>>) target(%68 : memref<1x128xf32, #tpu.memory_space<vmem>>) target_semaphore(%70 : memref<!tpu.dma_semaphore, #tpu.memory_space<semaphore_mem>>)
    %c10_i32 = arith.constant 10 : i32
    %71 = arith.addi %0, %c10_i32 : i32
    %72 = arith.index_cast %71 : i32 to index
    %73 = memref.load %arg1[%72] : memref<16xi32, #tpu.memory_space<smem>>
    %c10_i32_40 = arith.constant 10 : i32
    %c0_i32_41 = arith.constant 0 : i32
    %74 = tpu.memref_slice %arg2[%73, %c0_i32_41] : memref<32x128xf32, #tpu.memory_space<any>> -> memref<1x128xf32, #tpu.memory_space<any>>
    %c10_i32_42 = arith.constant 10 : i32
    %c0_i32_43 = arith.constant 0 : i32
    %75 = tpu.memref_slice %arg3[%c10_i32_42, %c0_i32_43] : memref<16x128xf32, #tpu.memory_space<vmem>> -> memref<1x128xf32, #tpu.memory_space<vmem>>
    %76 = tpu.memref_slice %arg4[%c10_i32_40] : memref<16x!tpu.dma_semaphore, #tpu.memory_space<semaphore_mem>> -> memref<1x!tpu.dma_semaphore, #tpu.memory_space<semaphore_mem>>
    %77 = tpu.memref_squeeze %76 : memref<1x!tpu.dma_semaphore, #tpu.memory_space<semaphore_mem>> -> memref<!tpu.dma_semaphore, #tpu.memory_space<semaphore_mem>>
    tpu.enqueue_dma source(%74 : memref<1x128xf32, #tpu.memory_space<any>>) target(%75 : memref<1x128xf32, #tpu.memory_space<vmem>>) target_semaphore(%77 : memref<!tpu.dma_semaphore, #tpu.memory_space<semaphore_mem>>)
    %c11_i32 = arith.constant 11 : i32
    %78 = arith.addi %0, %c11_i32 : i32
    %79 = arith.index_cast %78 : i32 to index
    %80 = memref.load %arg1[%79] : memref<16xi32, #tpu.memory_space<smem>>
    %c11_i32_44 = arith.constant 11 : i32
    %c0_i32_45 = arith.constant 0 : i32
    %81 = tpu.memref_slice %arg2[%80, %c0_i32_45] : memref<32x128xf32, #tpu.memory_space<any>> -> memref<1x128xf32, #tpu.memory_space<any>>
    %c11_i32_46 = arith.constant 11 : i32
    %c0_i32_47 = arith.constant 0 : i32
    %82 = tpu.memref_slice %arg3[%c11_i32_46, %c0_i32_47] : memref<16x128xf32, #tpu.memory_space<vmem>> -> memref<1x128xf32, #tpu.memory_space<vmem>>
    %83 = tpu.memref_slice %arg4[%c11_i32_44] : memref<16x!tpu.dma_semaphore, #tpu.memory_space<semaphore_mem>> -> memref<1x!tpu.dma_semaphore, #tpu.memory_space<semaphore_mem>>
    %84 = tpu.memref_squeeze %83 : memref<1x!tpu.dma_semaphore, #tpu.memory_space<semaphore_mem>> -> memref<!tpu.dma_semaphore, #tpu.memory_space<semaphore_mem>>
    tpu.enqueue_dma source(%81 : memref<1x128xf32, #tpu.memory_space<any>>) target(%82 : memref<1x128xf32, #tpu.memory_space<vmem>>) target_semaphore(%84 : memref<!tpu.dma_semaphore, #tpu.memory_space<semaphore_mem>>)
    %c12_i32 = arith.constant 12 : i32
    %85 = arith.addi %0, %c12_i32 : i32
    %86 = arith.index_cast %85 : i32 to index
    %87 = memref.load %arg1[%86] : memref<16xi32, #tpu.memory_space<smem>>
    %c12_i32_48 = arith.constant 12 : i32
    %c0_i32_49 = arith.constant 0 : i32
    %88 = tpu.memref_slice %arg2[%87, %c0_i32_49] : memref<32x128xf32, #tpu.memory_space<any>> -> memref<1x128xf32, #tpu.memory_space<any>>
    %c12_i32_50 = arith.constant 12 : i32
    %c0_i32_51 = arith.constant 0 : i32
    %89 = tpu.memref_slice %arg3[%c12_i32_50, %c0_i32_51] : memref<16x128xf32, #tpu.memory_space<vmem>> -> memref<1x128xf32, #tpu.memory_space<vmem>>
    %90 = tpu.memref_slice %arg4[%c12_i32_48] : memref<16x!tpu.dma_semaphore, #tpu.memory_space<semaphore_mem>> -> memref<1x!tpu.dma_semaphore, #tpu.memory_space<semaphore_mem>>
    %91 = tpu.memref_squeeze %90 : memref<1x!tpu.dma_semaphore, #tpu.memory_space<semaphore_mem>> -> memref<!tpu.dma_semaphore, #tpu.memory_space<semaphore_mem>>
    tpu.enqueue_dma source(%88 : memref<1x128xf32, #tpu.memory_space<any>>) target(%89 : memref<1x128xf32, #tpu.memory_space<vmem>>) target_semaphore(%91 : memref<!tpu.dma_semaphore, #tpu.memory_space<semaphore_mem>>)
    %c13_i32 = arith.constant 13 : i32
    %92 = arith.addi %0, %c13_i32 : i32
    %93 = arith.index_cast %92 : i32 to index
    %94 = memref.load %arg1[%93] : memref<16xi32, #tpu.memory_space<smem>>
    %c13_i32_52 = arith.constant 13 : i32
    %c0_i32_53 = arith.constant 0 : i32
    %95 = tpu.memref_slice %arg2[%94, %c0_i32_53] : memref<32x128xf32, #tpu.memory_space<any>> -> memref<1x128xf32, #tpu.memory_space<any>>
    %c13_i32_54 = arith.constant 13 : i32
    %c0_i32_55 = arith.constant 0 : i32
    %96 = tpu.memref_slice %arg3[%c13_i32_54, %c0_i32_55] : memref<16x128xf32, #tpu.memory_space<vmem>> -> memref<1x128xf32, #tpu.memory_space<vmem>>
    %97 = tpu.memref_slice %arg4[%c13_i32_52] : memref<16x!tpu.dma_semaphore, #tpu.memory_space<semaphore_mem>> -> memref<1x!tpu.dma_semaphore, #tpu.memory_space<semaphore_mem>>
    %98 = tpu.memref_squeeze %97 : memref<1x!tpu.dma_semaphore, #tpu.memory_space<semaphore_mem>> -> memref<!tpu.dma_semaphore, #tpu.memory_space<semaphore_mem>>
    tpu.enqueue_dma source(%95 : memref<1x128xf32, #tpu.memory_space<any>>) target(%96 : memref<1x128xf32, #tpu.memory_space<vmem>>) target_semaphore(%98 : memref<!tpu.dma_semaphore, #tpu.memory_space<semaphore_mem>>)
    %c14_i32 = arith.constant 14 : i32
    %99 = arith.addi %0, %c14_i32 : i32
    %100 = arith.index_cast %99 : i32 to index
    %101 = memref.load %arg1[%100] : memref<16xi32, #tpu.memory_space<smem>>
    %c14_i32_56 = arith.constant 14 : i32
    %c0_i32_57 = arith.constant 0 : i32
    %102 = tpu.memref_slice %arg2[%101, %c0_i32_57] : memref<32x128xf32, #tpu.memory_space<any>> -> memref<1x128xf32, #tpu.memory_space<any>>
    %c14_i32_58 = arith.constant 14 : i32
    %c0_i32_59 = arith.constant 0 : i32
    %103 = tpu.memref_slice %arg3[%c14_i32_58, %c0_i32_59] : memref<16x128xf32, #tpu.memory_space<vmem>> -> memref<1x128xf32, #tpu.memory_space<vmem>>
    %104 = tpu.memref_slice %arg4[%c14_i32_56] : memref<16x!tpu.dma_semaphore, #tpu.memory_space<semaphore_mem>> -> memref<1x!tpu.dma_semaphore, #tpu.memory_space<semaphore_mem>>
    %105 = tpu.memref_squeeze %104 : memref<1x!tpu.dma_semaphore, #tpu.memory_space<semaphore_mem>> -> memref<!tpu.dma_semaphore, #tpu.memory_space<semaphore_mem>>
    tpu.enqueue_dma source(%102 : memref<1x128xf32, #tpu.memory_space<any>>) target(%103 : memref<1x128xf32, #tpu.memory_space<vmem>>) target_semaphore(%105 : memref<!tpu.dma_semaphore, #tpu.memory_space<semaphore_mem>>)
    %c15_i32 = arith.constant 15 : i32
    %106 = arith.addi %0, %c15_i32 : i32
    %107 = arith.index_cast %106 : i32 to index
    %108 = memref.load %arg1[%107] : memref<16xi32, #tpu.memory_space<smem>>
    %c15_i32_60 = arith.constant 15 : i32
    %c0_i32_61 = arith.constant 0 : i32
    %109 = tpu.memref_slice %arg2[%108, %c0_i32_61] : memref<32x128xf32, #tpu.memory_space<any>> -> memref<1x128xf32, #tpu.memory_space<any>>
    %c15_i32_62 = arith.constant 15 : i32
    %c0_i32_63 = arith.constant 0 : i32
    %110 = tpu.memref_slice %arg3[%c15_i32_62, %c0_i32_63] : memref<16x128xf32, #tpu.memory_space<vmem>> -> memref<1x128xf32, #tpu.memory_space<vmem>>
    %111 = tpu.memref_slice %arg4[%c15_i32_60] : memref<16x!tpu.dma_semaphore, #tpu.memory_space<semaphore_mem>> -> memref<1x!tpu.dma_semaphore, #tpu.memory_space<semaphore_mem>>
    %112 = tpu.memref_squeeze %111 : memref<1x!tpu.dma_semaphore, #tpu.memory_space<semaphore_mem>> -> memref<!tpu.dma_semaphore, #tpu.memory_space<semaphore_mem>>
    tpu.enqueue_dma source(%109 : memref<1x128xf32, #tpu.memory_space<any>>) target(%110 : memref<1x128xf32, #tpu.memory_space<vmem>>) target_semaphore(%112 : memref<!tpu.dma_semaphore, #tpu.memory_space<semaphore_mem>>)
    %c0_i32_64 = arith.constant 0 : i32
    %c0_i32_65 = arith.constant 0 : i32
    %113 = tpu.memref_slice %arg2[%3, %c0_i32_65] : memref<32x128xf32, #tpu.memory_space<any>> -> memref<1x128xf32, #tpu.memory_space<any>>
    %c0_i32_66 = arith.constant 0 : i32
    %c0_i32_67 = arith.constant 0 : i32
    %114 = tpu.memref_slice %arg3[%c0_i32_66, %c0_i32_67] : memref<16x128xf32, #tpu.memory_space<vmem>> -> memref<1x128xf32, #tpu.memory_space<vmem>>
    %115 = tpu.memref_slice %arg4[%c0_i32_64] : memref<16x!tpu.dma_semaphore, #tpu.memory_space<semaphore_mem>> -> memref<1x!tpu.dma_semaphore, #tpu.memory_space<semaphore_mem>>
    %116 = tpu.memref_squeeze %115 : memref<1x!tpu.dma_semaphore, #tpu.memory_space<semaphore_mem>> -> memref<!tpu.dma_semaphore, #tpu.memory_space<semaphore_mem>>
    tpu.wait_dma2 semaphore(%116 : memref<!tpu.dma_semaphore, #tpu.memory_space<semaphore_mem>>) src(%113 : memref<1x128xf32, #tpu.memory_space<any>>) dst(%114 : memref<1x128xf32, #tpu.memory_space<vmem>>)
    %c1_i32_68 = arith.constant 1 : i32
    %c0_i32_69 = arith.constant 0 : i32
    %117 = tpu.memref_slice %arg2[%10, %c0_i32_69] : memref<32x128xf32, #tpu.memory_space<any>> -> memref<1x128xf32, #tpu.memory_space<any>>
    %c1_i32_70 = arith.constant 1 : i32
    %c0_i32_71 = arith.constant 0 : i32
    %118 = tpu.memref_slice %arg3[%c1_i32_70, %c0_i32_71] : memref<16x128xf32, #tpu.memory_space<vmem>> -> memref<1x128xf32, #tpu.memory_space<vmem>>
    %119 = tpu.memref_slice %arg4[%c1_i32_68] : memref<16x!tpu.dma_semaphore, #tpu.memory_space<semaphore_mem>> -> memref<1x!tpu.dma_semaphore, #tpu.memory_space<semaphore_mem>>
    %120 = tpu.memref_squeeze %119 : memref<1x!tpu.dma_semaphore, #tpu.memory_space<semaphore_mem>> -> memref<!tpu.dma_semaphore, #tpu.memory_space<semaphore_mem>>
    tpu.wait_dma2 semaphore(%120 : memref<!tpu.dma_semaphore, #tpu.memory_space<semaphore_mem>>) src(%117 : memref<1x128xf32, #tpu.memory_space<any>>) dst(%118 : memref<1x128xf32, #tpu.memory_space<vmem>>)
    %c2_i32_72 = arith.constant 2 : i32
    %c0_i32_73 = arith.constant 0 : i32
    %121 = tpu.memref_slice %arg2[%17, %c0_i32_73] : memref<32x128xf32, #tpu.memory_space<any>> -> memref<1x128xf32, #tpu.memory_space<any>>
    %c2_i32_74 = arith.constant 2 : i32
    %c0_i32_75 = arith.constant 0 : i32
    %122 = tpu.memref_slice %arg3[%c2_i32_74, %c0_i32_75] : memref<16x128xf32, #tpu.memory_space<vmem>> -> memref<1x128xf32, #tpu.memory_space<vmem>>
    %123 = tpu.memref_slice %arg4[%c2_i32_72] : memref<16x!tpu.dma_semaphore, #tpu.memory_space<semaphore_mem>> -> memref<1x!tpu.dma_semaphore, #tpu.memory_space<semaphore_mem>>
    %124 = tpu.memref_squeeze %123 : memref<1x!tpu.dma_semaphore, #tpu.memory_space<semaphore_mem>> -> memref<!tpu.dma_semaphore, #tpu.memory_space<semaphore_mem>>
    tpu.wait_dma2 semaphore(%124 : memref<!tpu.dma_semaphore, #tpu.memory_space<semaphore_mem>>) src(%121 : memref<1x128xf32, #tpu.memory_space<any>>) dst(%122 : memref<1x128xf32, #tpu.memory_space<vmem>>)
    %c3_i32_76 = arith.constant 3 : i32
    %c0_i32_77 = arith.constant 0 : i32
    %125 = tpu.memref_slice %arg2[%24, %c0_i32_77] : memref<32x128xf32, #tpu.memory_space<any>> -> memref<1x128xf32, #tpu.memory_space<any>>
    %c3_i32_78 = arith.constant 3 : i32
    %c0_i32_79 = arith.constant 0 : i32
    %126 = tpu.memref_slice %arg3[%c3_i32_78, %c0_i32_79] : memref<16x128xf32, #tpu.memory_space<vmem>> -> memref<1x128xf32, #tpu.memory_space<vmem>>
    %127 = tpu.memref_slice %arg4[%c3_i32_76] : memref<16x!tpu.dma_semaphore, #tpu.memory_space<semaphore_mem>> -> memref<1x!tpu.dma_semaphore, #tpu.memory_space<semaphore_mem>>
    %128 = tpu.memref_squeeze %127 : memref<1x!tpu.dma_semaphore, #tpu.memory_space<semaphore_mem>> -> memref<!tpu.dma_semaphore, #tpu.memory_space<semaphore_mem>>
    tpu.wait_dma2 semaphore(%128 : memref<!tpu.dma_semaphore, #tpu.memory_space<semaphore_mem>>) src(%125 : memref<1x128xf32, #tpu.memory_space<any>>) dst(%126 : memref<1x128xf32, #tpu.memory_space<vmem>>)
    %c4_i32_80 = arith.constant 4 : i32
    %c0_i32_81 = arith.constant 0 : i32
    %129 = tpu.memref_slice %arg2[%31, %c0_i32_81] : memref<32x128xf32, #tpu.memory_space<any>> -> memref<1x128xf32, #tpu.memory_space<any>>
    %c4_i32_82 = arith.constant 4 : i32
    %c0_i32_83 = arith.constant 0 : i32
    %130 = tpu.memref_slice %arg3[%c4_i32_82, %c0_i32_83] : memref<16x128xf32, #tpu.memory_space<vmem>> -> memref<1x128xf32, #tpu.memory_space<vmem>>
    %131 = tpu.memref_slice %arg4[%c4_i32_80] : memref<16x!tpu.dma_semaphore, #tpu.memory_space<semaphore_mem>> -> memref<1x!tpu.dma_semaphore, #tpu.memory_space<semaphore_mem>>
    %132 = tpu.memref_squeeze %131 : memref<1x!tpu.dma_semaphore, #tpu.memory_space<semaphore_mem>> -> memref<!tpu.dma_semaphore, #tpu.memory_space<semaphore_mem>>
    tpu.wait_dma2 semaphore(%132 : memref<!tpu.dma_semaphore, #tpu.memory_space<semaphore_mem>>) src(%129 : memref<1x128xf32, #tpu.memory_space<any>>) dst(%130 : memref<1x128xf32, #tpu.memory_space<vmem>>)
    %c5_i32_84 = arith.constant 5 : i32
    %c0_i32_85 = arith.constant 0 : i32
    %133 = tpu.memref_slice %arg2[%38, %c0_i32_85] : memref<32x128xf32, #tpu.memory_space<any>> -> memref<1x128xf32, #tpu.memory_space<any>>
    %c5_i32_86 = arith.constant 5 : i32
    %c0_i32_87 = arith.constant 0 : i32
    %134 = tpu.memref_slice %arg3[%c5_i32_86, %c0_i32_87] : memref<16x128xf32, #tpu.memory_space<vmem>> -> memref<1x128xf32, #tpu.memory_space<vmem>>
    %135 = tpu.memref_slice %arg4[%c5_i32_84] : memref<16x!tpu.dma_semaphore, #tpu.memory_space<semaphore_mem>> -> memref<1x!tpu.dma_semaphore, #tpu.memory_space<semaphore_mem>>
    %136 = tpu.memref_squeeze %135 : memref<1x!tpu.dma_semaphore, #tpu.memory_space<semaphore_mem>> -> memref<!tpu.dma_semaphore, #tpu.memory_space<semaphore_mem>>
    tpu.wait_dma2 semaphore(%136 : memref<!tpu.dma_semaphore, #tpu.memory_space<semaphore_mem>>) src(%133 : memref<1x128xf32, #tpu.memory_space<any>>) dst(%134 : memref<1x128xf32, #tpu.memory_space<vmem>>)
    %c6_i32_88 = arith.constant 6 : i32
    %c0_i32_89 = arith.constant 0 : i32
    %137 = tpu.memref_slice %arg2[%45, %c0_i32_89] : memref<32x128xf32, #tpu.memory_space<any>> -> memref<1x128xf32, #tpu.memory_space<any>>
    %c6_i32_90 = arith.constant 6 : i32
    %c0_i32_91 = arith.constant 0 : i32
    %138 = tpu.memref_slice %arg3[%c6_i32_90, %c0_i32_91] : memref<16x128xf32, #tpu.memory_space<vmem>> -> memref<1x128xf32, #tpu.memory_space<vmem>>
    %139 = tpu.memref_slice %arg4[%c6_i32_88] : memref<16x!tpu.dma_semaphore, #tpu.memory_space<semaphore_mem>> -> memref<1x!tpu.dma_semaphore, #tpu.memory_space<semaphore_mem>>
    %140 = tpu.memref_squeeze %139 : memref<1x!tpu.dma_semaphore, #tpu.memory_space<semaphore_mem>> -> memref<!tpu.dma_semaphore, #tpu.memory_space<semaphore_mem>>
    tpu.wait_dma2 semaphore(%140 : memref<!tpu.dma_semaphore, #tpu.memory_space<semaphore_mem>>) src(%137 : memref<1x128xf32, #tpu.memory_space<any>>) dst(%138 : memref<1x128xf32, #tpu.memory_space<vmem>>)
    %c7_i32_92 = arith.constant 7 : i32
    %c0_i32_93 = arith.constant 0 : i32
    %141 = tpu.memref_slice %arg2[%52, %c0_i32_93] : memref<32x128xf32, #tpu.memory_space<any>> -> memref<1x128xf32, #tpu.memory_space<any>>
    %c7_i32_94 = arith.constant 7 : i32
    %c0_i32_95 = arith.constant 0 : i32
    %142 = tpu.memref_slice %arg3[%c7_i32_94, %c0_i32_95] : memref<16x128xf32, #tpu.memory_space<vmem>> -> memref<1x128xf32, #tpu.memory_space<vmem>>
    %143 = tpu.memref_slice %arg4[%c7_i32_92] : memref<16x!tpu.dma_semaphore, #tpu.memory_space<semaphore_mem>> -> memref<1x!tpu.dma_semaphore, #tpu.memory_space<semaphore_mem>>
    %144 = tpu.memref_squeeze %143 : memref<1x!tpu.dma_semaphore, #tpu.memory_space<semaphore_mem>> -> memref<!tpu.dma_semaphore, #tpu.memory_space<semaphore_mem>>
    tpu.wait_dma2 semaphore(%144 : memref<!tpu.dma_semaphore, #tpu.memory_space<semaphore_mem>>) src(%141 : memref<1x128xf32, #tpu.memory_space<any>>) dst(%142 : memref<1x128xf32, #tpu.memory_space<vmem>>)
    %c8_i32_96 = arith.constant 8 : i32
    %c0_i32_97 = arith.constant 0 : i32
    %145 = tpu.memref_slice %arg2[%59, %c0_i32_97] : memref<32x128xf32, #tpu.memory_space<any>> -> memref<1x128xf32, #tpu.memory_space<any>>
    %c8_i32_98 = arith.constant 8 : i32
    %c0_i32_99 = arith.constant 0 : i32
    %146 = tpu.memref_slice %arg3[%c8_i32_98, %c0_i32_99] : memref<16x128xf32, #tpu.memory_space<vmem>> -> memref<1x128xf32, #tpu.memory_space<vmem>>
    %147 = tpu.memref_slice %arg4[%c8_i32_96] : memref<16x!tpu.dma_semaphore, #tpu.memory_space<semaphore_mem>> -> memref<1x!tpu.dma_semaphore, #tpu.memory_space<semaphore_mem>>
    %148 = tpu.memref_squeeze %147 : memref<1x!tpu.dma_semaphore, #tpu.memory_space<semaphore_mem>> -> memref<!tpu.dma_semaphore, #tpu.memory_space<semaphore_mem>>
    tpu.wait_dma2 semaphore(%148 : memref<!tpu.dma_semaphore, #tpu.memory_space<semaphore_mem>>) src(%145 : memref<1x128xf32, #tpu.memory_space<any>>) dst(%146 : memref<1x128xf32, #tpu.memory_space<vmem>>)
    %c9_i32_100 = arith.constant 9 : i32
    %c0_i32_101 = arith.constant 0 : i32
    %149 = tpu.memref_slice %arg2[%66, %c0_i32_101] : memref<32x128xf32, #tpu.memory_space<any>> -> memref<1x128xf32, #tpu.memory_space<any>>
    %c9_i32_102 = arith.constant 9 : i32
    %c0_i32_103 = arith.constant 0 : i32
    %150 = tpu.memref_slice %arg3[%c9_i32_102, %c0_i32_103] : memref<16x128xf32, #tpu.memory_space<vmem>> -> memref<1x128xf32, #tpu.memory_space<vmem>>
    %151 = tpu.memref_slice %arg4[%c9_i32_100] : memref<16x!tpu.dma_semaphore, #tpu.memory_space<semaphore_mem>> -> memref<1x!tpu.dma_semaphore, #tpu.memory_space<semaphore_mem>>
    %152 = tpu.memref_squeeze %151 : memref<1x!tpu.dma_semaphore, #tpu.memory_space<semaphore_mem>> -> memref<!tpu.dma_semaphore, #tpu.memory_space<semaphore_mem>>
    tpu.wait_dma2 semaphore(%152 : memref<!tpu.dma_semaphore, #tpu.memory_space<semaphore_mem>>) src(%149 : memref<1x128xf32, #tpu.memory_space<any>>) dst(%150 : memref<1x128xf32, #tpu.memory_space<vmem>>)
    %c10_i32_104 = arith.constant 10 : i32
    %c0_i32_105 = arith.constant 0 : i32
    %153 = tpu.memref_slice %arg2[%73, %c0_i32_105] : memref<32x128xf32, #tpu.memory_space<any>> -> memref<1x128xf32, #tpu.memory_space<any>>
    %c10_i32_106 = arith.constant 10 : i32
    %c0_i32_107 = arith.constant 0 : i32
    %154 = tpu.memref_slice %arg3[%c10_i32_106, %c0_i32_107] : memref<16x128xf32, #tpu.memory_space<vmem>> -> memref<1x128xf32, #tpu.memory_space<vmem>>
    %155 = tpu.memref_slice %arg4[%c10_i32_104] : memref<16x!tpu.dma_semaphore, #tpu.memory_space<semaphore_mem>> -> memref<1x!tpu.dma_semaphore, #tpu.memory_space<semaphore_mem>>
    %156 = tpu.memref_squeeze %155 : memref<1x!tpu.dma_semaphore, #tpu.memory_space<semaphore_mem>> -> memref<!tpu.dma_semaphore, #tpu.memory_space<semaphore_mem>>
    tpu.wait_dma2 semaphore(%156 : memref<!tpu.dma_semaphore, #tpu.memory_space<semaphore_mem>>) src(%153 : memref<1x128xf32, #tpu.memory_space<any>>) dst(%154 : memref<1x128xf32, #tpu.memory_space<vmem>>)
    %c11_i32_108 = arith.constant 11 : i32
    %c0_i32_109 = arith.constant 0 : i32
    %157 = tpu.memref_slice %arg2[%80, %c0_i32_109] : memref<32x128xf32, #tpu.memory_space<any>> -> memref<1x128xf32, #tpu.memory_space<any>>
    %c11_i32_110 = arith.constant 11 : i32
    %c0_i32_111 = arith.constant 0 : i32
    %158 = tpu.memref_slice %arg3[%c11_i32_110, %c0_i32_111] : memref<16x128xf32, #tpu.memory_space<vmem>> -> memref<1x128xf32, #tpu.memory_space<vmem>>
    %159 = tpu.memref_slice %arg4[%c11_i32_108] : memref<16x!tpu.dma_semaphore, #tpu.memory_space<semaphore_mem>> -> memref<1x!tpu.dma_semaphore, #tpu.memory_space<semaphore_mem>>
    %160 = tpu.memref_squeeze %159 : memref<1x!tpu.dma_semaphore, #tpu.memory_space<semaphore_mem>> -> memref<!tpu.dma_semaphore, #tpu.memory_space<semaphore_mem>>
    tpu.wait_dma2 semaphore(%160 : memref<!tpu.dma_semaphore, #tpu.memory_space<semaphore_mem>>) src(%157 : memref<1x128xf32, #tpu.memory_space<any>>) dst(%158 : memref<1x128xf32, #tpu.memory_space<vmem>>)
    %c12_i32_112 = arith.constant 12 : i32
    %c0_i32_113 = arith.constant 0 : i32
    %161 = tpu.memref_slice %arg2[%87, %c0_i32_113] : memref<32x128xf32, #tpu.memory_space<any>> -> memref<1x128xf32, #tpu.memory_space<any>>
    %c12_i32_114 = arith.constant 12 : i32
    %c0_i32_115 = arith.constant 0 : i32
    %162 = tpu.memref_slice %arg3[%c12_i32_114, %c0_i32_115] : memref<16x128xf32, #tpu.memory_space<vmem>> -> memref<1x128xf32, #tpu.memory_space<vmem>>
    %163 = tpu.memref_slice %arg4[%c12_i32_112] : memref<16x!tpu.dma_semaphore, #tpu.memory_space<semaphore_mem>> -> memref<1x!tpu.dma_semaphore, #tpu.memory_space<semaphore_mem>>
    %164 = tpu.memref_squeeze %163 : memref<1x!tpu.dma_semaphore, #tpu.memory_space<semaphore_mem>> -> memref<!tpu.dma_semaphore, #tpu.memory_space<semaphore_mem>>
    tpu.wait_dma2 semaphore(%164 : memref<!tpu.dma_semaphore, #tpu.memory_space<semaphore_mem>>) src(%161 : memref<1x128xf32, #tpu.memory_space<any>>) dst(%162 : memref<1x128xf32, #tpu.memory_space<vmem>>)
    %c13_i32_116 = arith.constant 13 : i32
    %c0_i32_117 = arith.constant 0 : i32
    %165 = tpu.memref_slice %arg2[%94, %c0_i32_117] : memref<32x128xf32, #tpu.memory_space<any>> -> memref<1x128xf32, #tpu.memory_space<any>>
    %c13_i32_118 = arith.constant 13 : i32
    %c0_i32_119 = arith.constant 0 : i32
    %166 = tpu.memref_slice %arg3[%c13_i32_118, %c0_i32_119] : memref<16x128xf32, #tpu.memory_space<vmem>> -> memref<1x128xf32, #tpu.memory_space<vmem>>
    %167 = tpu.memref_slice %arg4[%c13_i32_116] : memref<16x!tpu.dma_semaphore, #tpu.memory_space<semaphore_mem>> -> memref<1x!tpu.dma_semaphore, #tpu.memory_space<semaphore_mem>>
    %168 = tpu.memref_squeeze %167 : memref<1x!tpu.dma_semaphore, #tpu.memory_space<semaphore_mem>> -> memref<!tpu.dma_semaphore, #tpu.memory_space<semaphore_mem>>
    tpu.wait_dma2 semaphore(%168 : memref<!tpu.dma_semaphore, #tpu.memory_space<semaphore_mem>>) src(%165 : memref<1x128xf32, #tpu.memory_space<any>>) dst(%166 : memref<1x128xf32, #tpu.memory_space<vmem>>)
    %c14_i32_120 = arith.constant 14 : i32
    %c0_i32_121 = arith.constant 0 : i32
    %169 = tpu.memref_slice %arg2[%101, %c0_i32_121] : memref<32x128xf32, #tpu.memory_space<any>> -> memref<1x128xf32, #tpu.memory_space<any>>
    %c14_i32_122 = arith.constant 14 : i32
    %c0_i32_123 = arith.constant 0 : i32
    %170 = tpu.memref_slice %arg3[%c14_i32_122, %c0_i32_123] : memref<16x128xf32, #tpu.memory_space<vmem>> -> memref<1x128xf32, #tpu.memory_space<vmem>>
    %171 = tpu.memref_slice %arg4[%c14_i32_120] : memref<16x!tpu.dma_semaphore, #tpu.memory_space<semaphore_mem>> -> memref<1x!tpu.dma_semaphore, #tpu.memory_space<semaphore_mem>>
    %172 = tpu.memref_squeeze %171 : memref<1x!tpu.dma_semaphore, #tpu.memory_space<semaphore_mem>> -> memref<!tpu.dma_semaphore, #tpu.memory_space<semaphore_mem>>
    tpu.wait_dma2 semaphore(%172 : memref<!tpu.dma_semaphore, #tpu.memory_space<semaphore_mem>>) src(%169 : memref<1x128xf32, #tpu.memory_space<any>>) dst(%170 : memref<1x128xf32, #tpu.memory_space<vmem>>)
    %c15_i32_124 = arith.constant 15 : i32
    %c0_i32_125 = arith.constant 0 : i32
    %173 = tpu.memref_slice %arg2[%108, %c0_i32_125] : memref<32x128xf32, #tpu.memory_space<any>> -> memref<1x128xf32, #tpu.memory_space<any>>
    %c15_i32_126 = arith.constant 15 : i32
    %c0_i32_127 = arith.constant 0 : i32
    %174 = tpu.memref_slice %arg3[%c15_i32_126, %c0_i32_127] : memref<16x128xf32, #tpu.memory_space<vmem>> -> memref<1x128xf32, #tpu.memory_space<vmem>>
    %175 = tpu.memref_slice %arg4[%c15_i32_124] : memref<16x!tpu.dma_semaphore, #tpu.memory_space<semaphore_mem>> -> memref<1x!tpu.dma_semaphore, #tpu.memory_space<semaphore_mem>>
    %176 = tpu.memref_squeeze %175 : memref<1x!tpu.dma_semaphore, #tpu.memory_space<semaphore_mem>> -> memref<!tpu.dma_semaphore, #tpu.memory_space<semaphore_mem>>
    tpu.wait_dma2 semaphore(%176 : memref<!tpu.dma_semaphore, #tpu.memory_space<semaphore_mem>>) src(%173 : memref<1x128xf32, #tpu.memory_space<any>>) dst(%174 : memref<1x128xf32, #tpu.memory_space<vmem>>)
    return
  }
  func.func @transform_1(%arg0: i32, %arg1: memref<16xi32, #tpu.memory_space<smem>>) -> (i32, i32) {
    %c0_i32 = arith.constant 0 : i32
    %c0_i32_0 = arith.constant 0 : i32
    return %arg0, %c0_i32 : i32, i32
  }
}

</mosaic_0001>

<bundles_post_ra>
// kernel: tpu_custom_call.1
= control target key start
LH: loop header
LB: loop body
LE: loop exit
PB: predicated region body
PF: predicated region fallthrough
CT: control target
= control target key end

     0   :  { %s1324_s0 = inlined_call_operand.hbm [shape: s32[16], index: 0, kind: input, shape index: {}]   ;;  %s1325_s1 = inlined_call_operand.hbm [shape: f32[32,128], index: 1, kind: input, shape index: {}]   ;;  %s1326_s2 = inlined_call_operand.hbm [shape: f32[16,128], index: 2, kind: output, shape index: {}]  }
   0x1   :  { %s540_s11 = scalar_lea.hbm %s1324_s0, 16 }
   0x2   :  { %p541_p0 = scmp.ne.s32.totalorder %s1324_s0, %s540_s11  ;;  %p544_p1 = scmp.lt.u32.totalorder %s540_s11, %s1324_s0 }
   0x4   :  { %p546_p2 = pnand %p544_p1, %p541_p0 }
   0x6   :  { %549 = shalt.err (!%p546_p2)  }
   0x7   :  { %s992_s16 = smov [#allocation4]  }
   0x8   :  { %8 = dma.hbm_to_smem %s1324_s0, 16, %s992_s16, [#allocation3] }
   0x9   :  { %956 = dma.done.wait [#allocation3], 16 }
   0xa   :  { %957 = vsyncadd [#allocation3], 4294967280 }
   0xb   :  { %10 = sfence }
   0xc   :  { %11 = vsyncpa [#allocation6], 0  ;;  %s13_s19 = sld [smem:[#allocation4]]  ;;  %s993_s20 = smov [#allocation5]  }
   0xd   :  { %s23_s21 = sshll.u32 %s993_s20, 4  ;;  %s1038_s22 = sld [smem:[#allocation4 + $0x1]]  ;;  %s1040_s21 = int_to_ptr.vmem [resolvable:$true] %s23_s21 }
   0xe   :  { %s994_s23 = smov [#allocation5 + $0x1]   ;;  %s1042_s25 = sld [smem:[#allocation4 + $0x2]] }
   0xf   :  { %s40_s24 = sshll.u32 %s994_s23, 4  ;;  %s995_s26 = smov [#allocation5 + $0x2]   ;;  %s1044_s24 = int_to_ptr.vmem [resolvable:$true] %s40_s24 }
  0x10   :  { %s57_s0 = sshll.u32 %s995_s26, 4  ;;  %s1046_s27 = sld [smem:[#allocation4 + $0x3]]  ;;  %s1048_s0 = int_to_ptr.vmem [resolvable:$true] %s57_s0 }
  0x11   :  { %s1057_s8 = scalar_lea.hbm %s1325_s1, 512 }
  0x12   :  { %s474_s28 = sshll.u32 %s13_s19, 4 }
  0x13   :  { %s15_s3 = scalar_lea.hbm %s1325_s1, %s474_s28  ;;  %s476_s4 = sshll.u32 %s1038_s22, 4 }
  0x14   :  { %s550_s5 = scalar_lea.hbm %s15_s3, 16  ;;  %p553_p4 = scmp.lt.u32.totalorder %s15_s3, %s1325_s1 }
  0x15   :  { %p551_p3 = scmp.ne.s32.totalorder %s15_s3, %s550_s5  ;;  %p554_p5 = scmp.lt.u32.totalorder %s1057_s8, %s550_s5 }
  0x16   :  { %p556_p7 = scmp.lt.u32.totalorder %s550_s5, %s15_s3 }
  0x17   :  { %p555_p6 = por %p554_p5, %p553_p4 }
  0x19   :  { %p557_p8 = por %p556_p7, %p555_p6 }
  0x1b   :  { %p558_p9 = pnand %p557_p8, %p551_p3 }
  0x1d   :  { %561 = shalt.err (!%p558_p9)  }
  0x1e   :  { %s562_s11 = scalar_lea.vmem %s1040_s21, 16  ;;  %s1066_s12 = scalar_lea.vmem %s1040_s21, 256 }
  0x1f   :  { %p563_p10 = scmp.ne.s32.totalorder %s1040_s21, %s562_s11  ;;  %p567_p11 = scmp.lt.s32.totalorder %s1040_s21, %s1040_s21 }
  0x20   :  { %p568_p12 = scmp.lt.s32.totalorder %s1066_s12, %s562_s11 }
  0x22   :  { %p569_p13 = por %p568_p12, %p567_p11 }
  0x24   :  { %p570_p0 = pnand %p569_p13, %p563_p10 }
  0x26   :  { %573 = shalt.err (!%p570_p0)  }
  0x27   :  { %26 = dma.hbm_to_vmem [thread:$0]  %s15_s3, 16, %s1040_s21, [#allocation2] }
  0x28   :  { %s30_s15 = scalar_lea.hbm %s1325_s1, %s476_s4  ;;  %s478_s16 = sshll.u32 %s1042_s25, 4 }
  0x29   :  { %s574_s17 = scalar_lea.hbm %s30_s15, 16  ;;  %p577_p2 = scmp.lt.u32.totalorder %s30_s15, %s1325_s1 }
  0x2a   :  { %p575_p1 = scmp.ne.s32.totalorder %s30_s15, %s574_s17  ;;  %p578_p3 = scmp.lt.u32.totalorder %s1057_s8, %s574_s17 }
  0x2b   :  { %p580_p5 = scmp.lt.u32.totalorder %s574_s17, %s30_s15 }
  0x2c   :  { %p579_p4 = por %p578_p3, %p577_p2 }
  0x2e   :  { %p581_p6 = por %p580_p5, %p579_p4 }
  0x30   :  { %p582_p7 = pnand %p581_p6, %p575_p1 }
  0x32   :  { %585 = shalt.err (!%p582_p7)  }
  0x33   :  { %s586_s20 = scalar_lea.vmem %s1044_s24, 16  ;;  %p591_p9 = scmp.lt.s32.totalorder %s1044_s24, %s1040_s21 }
  0x34   :  { %p587_p8 = scmp.ne.s32.totalorder %s1044_s24, %s586_s20  ;;  %p592_p10 = scmp.lt.s32.totalorder %s1066_s12, %s586_s20 }
  0x36   :  { %p593_p12 = por %p592_p10, %p591_p9 }
  0x38   :  { %p594_p13 = pnand %p593_p12, %p587_p8 }
  0x3a   :  { %597 = shalt.err (!%p594_p13)  }
  0x3b   :  { %43 = dma.hbm_to_vmem [thread:$0]  %s30_s15, 16, %s1044_s24, [#allocation2 + $0x1] }
  0x3c   :  { %s47_s25 = scalar_lea.hbm %s1325_s1, %s478_s16  ;;  %s480_s26 = sshll.u32 %s1046_s27, 4 }
  0x3d   :  { %s598_s28 = scalar_lea.hbm %s47_s25, 16  ;;  %p601_p1 = scmp.lt.u32.totalorder %s47_s25, %s1325_s1 }
  0x3e   :  { %p599_p0 = scmp.ne.s32.totalorder %s47_s25, %s598_s28  ;;  %p602_p2 = scmp.lt.u32.totalorder %s1057_s8, %s598_s28 }
  0x3f   :  { %p604_p4 = scmp.lt.u32.totalorder %s598_s28, %s47_s25 }
  0x40   :  { %p603_p3 = por %p602_p2, %p601_p1 }
  0x42   :  { %p605_p5 = por %p604_p4, %p603_p3 }
  0x44   :  { %p606_p6 = pnand %p605_p5, %p599_p0 }
  0x46   :  { %609 = shalt.err (!%p606_p6)  }
  0x47   :  { %s610_s24 = scalar_lea.vmem %s1048_s0, 16  ;;  %p615_p8 = scmp.lt.s32.totalorder %s1048_s0, %s1040_s21 }
  0x48   :  { %p611_p7 = scmp.ne.s32.totalorder %s1048_s0, %s610_s24  ;;  %p616_p9 = scmp.lt.s32.totalorder %s1066_s12, %s610_s24 }
  0x4a   :  { %p617_p10 = por %p616_p9, %p615_p8 }
  0x4c   :  { %p618_p12 = pnand %p617_p10, %p611_p7 }
  0x4e   :  { %621 = shalt.err (!%p618_p12)  }
  0x4f   :  { %60 = dma.hbm_to_vmem [thread:$0]  %s47_s25, 16, %s1048_s0, [#allocation2 + $0x2] }
  0x50   :  { %s64_s4 = scalar_lea.hbm %s1325_s1, %s480_s26  ;;  %s996_s5 = smov [#allocation5 + $0x3]  }
  0x51   :  { %s74_s6 = sshll.u32 %s996_s5, 4  ;;  %s1106_s7 = sld [smem:[#allocation4 + $0x4]]  ;;  %s75_s6 = int_to_ptr.vmem [resolvable:$true] %s74_s6 }
  0x52   :  { %s622_s9 = scalar_lea.hbm %s64_s4, 16  ;;  %p625_p0 = scmp.lt.u32.totalorder %s64_s4, %s1325_s1 }
  0x53   :  { %p623_p13 = scmp.ne.s32.totalorder %s64_s4, %s622_s9  ;;  %p626_p1 = scmp.lt.u32.totalorder %s1057_s8, %s622_s9 }
  0x54   :  { %p628_p3 = scmp.lt.u32.totalorder %s622_s9, %s64_s4 }
  0x55   :  { %p627_p2 = por %p626_p1, %p625_p0 }
  0x57   :  { %p629_p4 = por %p628_p3, %p627_p2 }
  0x59   :  { %p630_p5 = pnand %p629_p4, %p623_p13 }
  0x5b   :  { %633 = shalt.err (!%p630_p5)  }
  0x5c   :  { %s634_s0 = scalar_lea.vmem %s75_s6, 16  ;;  %p639_p7 = scmp.lt.s32.totalorder %s75_s6, %s1040_s21 }
  0x5d   :  { %p635_p6 = scmp.ne.s32.totalorder %s75_s6, %s634_s0  ;;  %p640_p8 = scmp.lt.s32.totalorder %s1066_s12, %s634_s0 }
  0x5f   :  { %p641_p9 = por %p640_p8, %p639_p7 }
  0x61   :  { %p642_p10 = pnand %p641_p9, %p635_p6 }
  0x63   :  { %645 = shalt.err (!%p642_p10)  }
  0x64   :  { %77 = dma.hbm_to_vmem [thread:$0]  %s64_s4, 16, %s75_s6, [#allocation2 + $0x3] }
  0x65   :  { %s997_s13 = smov [#allocation5 + $0x4]   ;;  %s1114_s15 = sld [smem:[#allocation4 + $0x5]] }
  0x66   :  { %s91_s14 = sshll.u32 %s997_s13, 4  ;;  %s998_s16 = smov [#allocation5 + $0x5]   ;;  %s92_s14 = int_to_ptr.vmem [resolvable:$true] %s91_s14 }
  0x67   :  { %s108_s17 = sshll.u32 %s998_s16, 4  ;;  %s1116_s18 = sld [smem:[#allocation4 + $0x6]]  ;;  %s1119_s17 = int_to_ptr.vmem [resolvable:$true] %s108_s17 }
  0x68   :  { %s482_s19 = sshll.u32 %s1106_s7, 4 }
  0x69   :  { %s81_s23 = scalar_lea.hbm %s1325_s1, %s482_s19 }
  0x6a   :  { %s646_s25 = scalar_lea.hbm %s81_s23, 16  ;;  %p649_p13 = scmp.lt.u32.totalorder %s81_s23, %s1325_s1 }
  0x6b   :  { %p647_p12 = scmp.ne.s32.totalorder %s81_s23, %s646_s25  ;;  %p650_p0 = scmp.lt.u32.totalorder %s1057_s8, %s646_s25 }
  0x6c   :  { %p652_p2 = scmp.lt.u32.totalorder %s646_s25, %s81_s23 }
  0x6d   :  { %p651_p1 = por %p650_p0, %p649_p13 }
  0x6f   :  { %p653_p3 = por %p652_p2, %p651_p1 }
  0x71   :  { %p654_p4 = pnand %p653_p3, %p647_p12 }
  0x73   :  { %657 = shalt.err (!%p654_p4)  }
  0x74   :  { %s658_s29 = scalar_lea.vmem %s92_s14, 16  ;;  %p663_p6 = scmp.lt.s32.totalorder %s92_s14, %s1040_s21 }
  0x75   :  { %p659_p5 = scmp.ne.s32.totalorder %s92_s14, %s658_s29  ;;  %p664_p7 = scmp.lt.s32.totalorder %s1066_s12, %s658_s29 }
  0x77   :  { %p665_p8 = por %p664_p7, %p663_p6 }
  0x79   :  { %p666_p9 = pnand %p665_p8, %p659_p5 }
  0x7b   :  { %669 = shalt.err (!%p666_p9)  }
  0x7c   :  { %94 = dma.hbm_to_vmem [thread:$0]  %s81_s23, 16, %s92_s14, [#allocation2 + $0x4] }
  0x7d   :  { %s484_s30 = sshll.u32 %s1114_s15, 4  ;;  %s999_s24 = smov [#allocation5 + $0x6]  }
  0x7e   :  { %s125_s27 = sshll.u32 %s999_s24, 4  ;;  %s98_s5 = scalar_lea.hbm %s1325_s1, %s484_s30  ;;  %s1134_s27 = int_to_ptr.vmem [resolvable:$true] %s125_s27 }
  0x7f   :  { %s670_s6 = scalar_lea.hbm %s98_s5, 16  ;;  %p673_p12 = scmp.lt.u32.totalorder %s98_s5, %s1325_s1 }
  0x80   :  { %p671_p10 = scmp.ne.s32.totalorder %s98_s5, %s670_s6  ;;  %p674_p13 = scmp.lt.u32.totalorder %s1057_s8, %s670_s6 }
  0x81   :  { %p676_p1 = scmp.lt.u32.totalorder %s670_s6, %s98_s5 }
  0x82   :  { %p675_p0 = por %p674_p13, %p673_p12 }
  0x84   :  { %p677_p2 = por %p676_p1, %p675_p0 }
  0x86   :  { %p678_p3 = pnand %p677_p2, %p671_p10 }
  0x88   :  { %681 = shalt.err (!%p678_p3)  }
  0x89   :  { %s682_s10 = scalar_lea.vmem %s1119_s17, 16  ;;  %p687_p5 = scmp.lt.s32.totalorder %s1119_s17, %s1040_s21 }
  0x8a   :  { %p683_p4 = scmp.ne.s32.totalorder %s1119_s17, %s682_s10  ;;  %p688_p6 = scmp.lt.s32.totalorder %s1066_s12, %s682_s10 }
  0x8c   :  { %p689_p7 = por %p688_p6, %p687_p5 }
  0x8e   :  { %p690_p8 = pnand %p689_p7, %p683_p4 }
  0x90   :  { %693 = shalt.err (!%p690_p8)  }
  0x91   :  { %111 = dma.hbm_to_vmem [thread:$0]  %s98_s5, 16, %s1119_s17, [#allocation2 + $0x5] }
  0x92   :  { %s486_s11 = sshll.u32 %s1116_s18, 4  ;;  %s1147_s0 = sld [smem:[#allocation4 + $0x7]] }
  0x93   :  { %s115_s15 = scalar_lea.hbm %s1325_s1, %s486_s11 }
  0x94   :  { %s694_s16 = scalar_lea.hbm %s115_s15, 16  ;;  %p697_p10 = scmp.lt.u32.totalorder %s115_s15, %s1325_s1 }
  0x95   :  { %p695_p9 = scmp.ne.s32.totalorder %s115_s15, %s694_s16  ;;  %p698_p12 = scmp.lt.u32.totalorder %s1057_s8, %s694_s16 }
  0x96   :  { %p700_p0 = scmp.lt.u32.totalorder %s694_s16, %s115_s15 }
  0x97   :  { %p699_p13 = por %p698_p12, %p697_p10 }
  0x99   :  { %p701_p1 = por %p700_p0, %p699_p13 }
  0x9b   :  { %p702_p2 = pnand %p701_p1, %p695_p9 }
  0x9d   :  { %705 = shalt.err (!%p702_p2)  }
  0x9e   :  { %s706_s17 = scalar_lea.vmem %s1134_s27, 16  ;;  %p711_p4 = scmp.lt.s32.totalorder %s1134_s27, %s1040_s21 }
  0x9f   :  { %p707_p3 = scmp.ne.s32.totalorder %s1134_s27, %s706_s17  ;;  %p712_p5 = scmp.lt.s32.totalorder %s1066_s12, %s706_s17 }
  0xa1   :  { %p713_p6 = por %p712_p5, %p711_p4 }
  0xa3   :  { %p714_p7 = pnand %p713_p6, %p707_p3 }
  0xa5   :  { %717 = shalt.err (!%p714_p7)  }
  0xa6   :  { %128 = dma.hbm_to_vmem [thread:$0]  %s115_s15, 16, %s1134_s27, [#allocation2 + $0x6] }
  0xa7   :  { %s1000_s18 = smov [#allocation5 + $0x7]   ;;  %s1162_s23 = sld [smem:[#allocation4 + $0x8]] }
  0xa8   :  { %s142_s22 = sshll.u32 %s1000_s18, 4  ;;  %s1001_s25 = smov [#allocation5 + $0x8]   ;;  %s143_s22 = int_to_ptr.vmem [resolvable:$true] %s142_s22 }
  0xa9   :  { %s159_s26 = sshll.u32 %s1001_s25, 4  ;;  %s1164_s28 = sld [smem:[#allocation4 + $0x9]]  ;;  %s1167_s26 = int_to_ptr.vmem [resolvable:$true] %s159_s26 }
  0xaa   :  { %s488_s29 = sshll.u32 %s1147_s0, 4 }
  0xab   :  { %s132_s3 = scalar_lea.hbm %s1325_s1, %s488_s29 }
  0xac   :  { %s718_s4 = scalar_lea.hbm %s132_s3, 16  ;;  %p721_p9 = scmp.lt.u32.totalorder %s132_s3, %s1325_s1 }
  0xad   :  { %p719_p8 = scmp.ne.s32.totalorder %s132_s3, %s718_s4  ;;  %p722_p10 = scmp.lt.u32.totalorder %s1057_s8, %s718_s4 }
  0xae   :  { %p724_p13 = scmp.lt.u32.totalorder %s718_s4, %s132_s3 }
  0xaf   :  { %p723_p12 = por %p722_p10, %p721_p9 }
  0xb1   :  { %p725_p0 = por %p724_p13, %p723_p12 }
  0xb3   :  { %p726_p1 = pnand %p725_p0, %p719_p8 }
  0xb5   :  { %729 = shalt.err (!%p726_p1)  }
  0xb6   :  { %s730_s6 = scalar_lea.vmem %s143_s22, 16  ;;  %p735_p3 = scmp.lt.s32.totalorder %s143_s22, %s1040_s21 }
  0xb7   :  { %p731_p2 = scmp.ne.s32.totalorder %s143_s22, %s730_s6  ;;  %p736_p4 = scmp.lt.s32.totalorder %s1066_s12, %s730_s6 }
  0xb9   :  { %p737_p5 = por %p736_p4, %p735_p3 }
  0xbb   :  { %p738_p6 = pnand %p737_p5, %p731_p2 }
  0xbd   :  { %741 = shalt.err (!%p738_p6)  }
  0xbe   :  { %145 = dma.hbm_to_vmem [thread:$0]  %s132_s3, 16, %s143_s22, [#allocation2 + $0x7] }
  0xbf   :  { %s490_s7 = sshll.u32 %s1162_s23, 4  ;;  %s1002_s9 = smov [#allocation5 + $0x9]  }
  0xc0   :  { %s176_s10 = sshll.u32 %s1002_s9, 4  ;;  %s149_s13 = scalar_lea.hbm %s1325_s1, %s490_s7  ;;  %s1182_s10 = int_to_ptr.vmem [resolvable:$true] %s176_s10 }
  0xc1   :  { %s742_s14 = scalar_lea.hbm %s149_s13, 16  ;;  %p745_p8 = scmp.lt.u32.totalorder %s149_s13, %s1325_s1 }
  0xc2   :  { %p743_p7 = scmp.ne.s32.totalorder %s149_s13, %s742_s14  ;;  %p746_p9 = scmp.lt.u32.totalorder %s1057_s8, %s742_s14 }
  0xc3   :  { %p748_p12 = scmp.lt.u32.totalorder %s742_s14, %s149_s13 }
  0xc4   :  { %p747_p10 = por %p746_p9, %p745_p8 }
  0xc6   :  { %p749_p13 = por %p748_p12, %p747_p10 }
  0xc8   :  { %p750_p0 = pnand %p749_p13, %p743_p7 }
  0xca   :  { %753 = shalt.err (!%p750_p0)  }
  0xcb   :  { %s754_s19 = scalar_lea.vmem %s1167_s26, 16  ;;  %p759_p2 = scmp.lt.s32.totalorder %s1167_s26, %s1040_s21 }
  0xcc   :  { %p755_p1 = scmp.ne.s32.totalorder %s1167_s26, %s754_s19  ;;  %p760_p3 = scmp.lt.s32.totalorder %s1066_s12, %s754_s19 }
  0xce   :  { %p761_p4 = por %p760_p3, %p759_p2 }
  0xd0   :  { %p762_p5 = pnand %p761_p4, %p755_p1 }
  0xd2   :  { %765 = shalt.err (!%p762_p5)  }
  0xd3   :  { %162 = dma.hbm_to_vmem [thread:$0]  %s149_s13, 16, %s1167_s26, [#allocation2 + $0x8] }
  0xd4   :  { %s492_s20 = sshll.u32 %s1164_s28, 4  ;;  %s1195_s17 = sld [smem:[#allocation4 + $0xa]] }
  0xd5   :  { %s166_s23 = scalar_lea.hbm %s1325_s1, %s492_s20 }
  0xd6   :  { %s766_s25 = scalar_lea.hbm %s166_s23, 16  ;;  %p769_p7 = scmp.lt.u32.totalorder %s166_s23, %s1325_s1 }
  0xd7   :  { %p767_p6 = scmp.ne.s32.totalorder %s166_s23, %s766_s25  ;;  %p770_p8 = scmp.lt.u32.totalorder %s1057_s8, %s766_s25 }
  0xd8   :  { %p772_p10 = scmp.lt.u32.totalorder %s766_s25, %s166_s23 }
  0xd9   :  { %p771_p9 = por %p770_p8, %p769_p7 }
  0xdb   :  { %p773_p12 = por %p772_p10, %p771_p9 }
  0xdd   :  { %p774_p13 = pnand %p773_p12, %p767_p6 }
  0xdf   :  { %777 = shalt.err (!%p774_p13)  }
  0xe0   :  { %s778_s26 = scalar_lea.vmem %s1182_s10, 16  ;;  %p783_p1 = scmp.lt.s32.totalorder %s1182_s10, %s1040_s21 }
  0xe1   :  { %p779_p0 = scmp.ne.s32.totalorder %s1182_s10, %s778_s26  ;;  %p784_p2 = scmp.lt.s32.totalorder %s1066_s12, %s778_s26 }
  0xe3   :  { %p785_p3 = por %p784_p2, %p783_p1 }
  0xe5   :  { %p786_p4 = pnand %p785_p3, %p779_p0 }
  0xe7   :  { %789 = shalt.err (!%p786_p4)  }
  0xe8   :  { %179 = dma.hbm_to_vmem [thread:$0]  %s166_s23, 16, %s1182_s10, [#allocation2 + $0x9] }
  0xe9   :  { %s1003_s28 = smov [#allocation5 + $0xa]   ;;  %s1210_s3 = sld [smem:[#allocation4 + $0xb]] }
  0xea   :  { %s193_s24 = sshll.u32 %s1003_s28, 4  ;;  %s1004_s4 = smov [#allocation5 + $0xb]   ;;  %s194_s24 = int_to_ptr.vmem [resolvable:$true] %s193_s24 }
  0xeb   :  { %s210_s5 = sshll.u32 %s1004_s4, 4  ;;  %s1212_s27 = sld [smem:[#allocation4 + $0xc]]  ;;  %s1215_s5 = int_to_ptr.vmem [resolvable:$true] %s210_s5 }
  0xec   :  { %s494_s6 = sshll.u32 %s1195_s17, 4 }
  0xed   :  { %s183_s11 = scalar_lea.hbm %s1325_s1, %s494_s6 }
  0xee   :  { %s790_s0 = scalar_lea.hbm %s183_s11, 16  ;;  %p793_p6 = scmp.lt.u32.totalorder %s183_s11, %s1325_s1 }
  0xef   :  { %p791_p5 = scmp.ne.s32.totalorder %s183_s11, %s790_s0  ;;  %p794_p7 = scmp.lt.u32.totalorder %s1057_s8, %s790_s0 }
  0xf0   :  { %p796_p9 = scmp.lt.u32.totalorder %s790_s0, %s183_s11 }
  0xf1   :  { %p795_p8 = por %p794_p7, %p793_p6 }
  0xf3   :  { %p797_p10 = por %p796_p9, %p795_p8 }
  0xf5   :  { %p798_p12 = pnand %p797_p10, %p791_p5 }
  0xf7   :  { %801 = shalt.err (!%p798_p12)  }
  0xf8   :  { %s802_s14 = scalar_lea.vmem %s194_s24, 16  ;;  %p807_p0 = scmp.lt.s32.totalorder %s194_s24, %s1040_s21 }
  0xf9   :  { %p803_p13 = scmp.ne.s32.totalorder %s194_s24, %s802_s14  ;;  %p808_p1 = scmp.lt.s32.totalorder %s1066_s12, %s802_s14 }
  0xfb   :  { %p809_p2 = por %p808_p1, %p807_p0 }
  0xfd   :  { %p810_p3 = pnand %p809_p2, %p803_p13 }
  0xff   :  { %813 = shalt.err (!%p810_p3)  }
 0x100   :  { %196 = dma.hbm_to_vmem [thread:$0]  %s183_s11, 16, %s194_s24, [#allocation2 + $0xa] }
 0x101   :  { %s496_s15 = sshll.u32 %s1210_s3, 4  ;;  %s1005_s16 = smov [#allocation5 + $0xc]  }
 0x102   :  { %s227_s19 = sshll.u32 %s1005_s16, 4  ;;  %s200_s18 = scalar_lea.hbm %s1325_s1, %s496_s15  ;;  %s1230_s19 = int_to_ptr.vmem [resolvable:$true] %s227_s19 }
 0x103   :  { %s814_s22 = scalar_lea.hbm %s200_s18, 16  ;;  %p817_p5 = scmp.lt.u32.totalorder %s200_s18, %s1325_s1 }
 0x104   :  { %p815_p4 = scmp.ne.s32.totalorder %s200_s18, %s814_s22  ;;  %p818_p6 = scmp.lt.u32.totalorder %s1057_s8, %s814_s22 }
 0x105   :  { %p820_p8 = scmp.lt.u32.totalorder %s814_s22, %s200_s18 }
 0x106   :  { %p819_p7 = por %p818_p6, %p817_p5 }
 0x108   :  { %p821_p9 = por %p820_p8, %p819_p7 }
 0x10a   :  { %p822_p10 = pnand %p821_p9, %p815_p4 }
 0x10c   :  { %825 = shalt.err (!%p822_p10)  }
 0x10d   :  { %s826_s29 = scalar_lea.vmem %s1215_s5, 16  ;;  %p831_p13 = scmp.lt.s32.totalorder %s1215_s5, %s1040_s21 }
 0x10e   :  { %p827_p12 = scmp.ne.s32.totalorder %s1215_s5, %s826_s29  ;;  %p832_p0 = scmp.lt.s32.totalorder %s1066_s12, %s826_s29 }
 0x110   :  { %p833_p1 = por %p832_p0, %p831_p13 }
 0x112   :  { %p834_p2 = pnand %p833_p1, %p827_p12 }
 0x114   :  { %837 = shalt.err (!%p834_p2)  }
 0x115   :  { %213 = dma.hbm_to_vmem [thread:$0]  %s200_s18, 16, %s1215_s5, [#allocation2 + $0xb] }
 0x116   :  { %s498_s30 = sshll.u32 %s1212_s27, 4  ;;  %s1243_s26 = sld [smem:[#allocation4 + $0xd]] }
 0x117   :  { %s217_s3 = scalar_lea.hbm %s1325_s1, %s498_s30 }
 0x118   :  { %s838_s4 = scalar_lea.hbm %s217_s3, 16  ;;  %p841_p4 = scmp.lt.u32.totalorder %s217_s3, %s1325_s1 }
 0x119   :  { %p839_p3 = scmp.ne.s32.totalorder %s217_s3, %s838_s4  ;;  %p842_p5 = scmp.lt.u32.totalorder %s1057_s8, %s838_s4 }
 0x11a   :  { %p844_p7 = scmp.lt.u32.totalorder %s838_s4, %s217_s3 }
 0x11b   :  { %p843_p6 = por %p842_p5, %p841_p4 }
 0x11d   :  { %p845_p8 = por %p844_p7, %p843_p6 }
 0x11f   :  { %p846_p9 = pnand %p845_p8, %p839_p3 }
 0x121   :  { %849 = shalt.err (!%p846_p9)  }
 0x122   :  { %s850_s5 = scalar_lea.vmem %s1230_s19, 16  ;;  %p855_p12 = scmp.lt.s32.totalorder %s1230_s19, %s1040_s21 }
 0x123   :  { %p851_p10 = scmp.ne.s32.totalorder %s1230_s19, %s850_s5  ;;  %p856_p13 = scmp.lt.s32.totalorder %s1066_s12, %s850_s5 }
 0x125   :  { %p857_p0 = por %p856_p13, %p855_p12 }
 0x127   :  { %p858_p1 = pnand %p857_p0, %p851_p10 }
 0x129   :  { %861 = shalt.err (!%p858_p1)  }
 0x12a   :  { %230 = dma.hbm_to_vmem [thread:$0]  %s217_s3, 16, %s1230_s19, [#allocation2 + $0xc] }
 0x12b   :  { %s1006_s27 = smov [#allocation5 + $0xd]   ;;  %s1258_s11 = sld [smem:[#allocation4 + $0xe]] }
 0x12c   :  { %s244_s9 = sshll.u32 %s1006_s27, 4  ;;  %s1007_s0 = smov [#allocation5 + $0xe]   ;;  %s245_s9 = int_to_ptr.vmem [resolvable:$true] %s244_s9 }
 0x12d   :  { %s261_s13 = sshll.u32 %s1007_s0, 4  ;;  %s1260_s10 = sld [smem:[#allocation4 + $0xf]]  ;;  %s1263_s13 = int_to_ptr.vmem [resolvable:$true] %s261_s13 }
 0x12e   :  { %s500_s14 = sshll.u32 %s1243_s26, 4 }
 0x12f   :  { %s234_s20 = scalar_lea.hbm %s1325_s1, %s500_s14 }
 0x130   :  { %s862_s17 = scalar_lea.hbm %s234_s20, 16  ;;  %p865_p3 = scmp.lt.u32.totalorder %s234_s20, %s1325_s1 }
 0x131   :  { %p863_p2 = scmp.ne.s32.totalorder %s234_s20, %s862_s17  ;;  %p866_p4 = scmp.lt.u32.totalorder %s1057_s8, %s862_s17 }
 0x132   :  { %p868_p6 = scmp.lt.u32.totalorder %s862_s17, %s234_s20 }
 0x133   :  { %p867_p5 = por %p866_p4, %p865_p3 }
 0x135   :  { %p869_p7 = por %p868_p6, %p867_p5 }
 0x137   :  { %p870_p8 = pnand %p869_p7, %p863_p2 }
 0x139   :  { %873 = shalt.err (!%p870_p8)  }
 0x13a   :  { %s874_s22 = scalar_lea.vmem %s245_s9, 16  ;;  %p879_p10 = scmp.lt.s32.totalorder %s245_s9, %s1040_s21 }
 0x13b   :  { %p875_p9 = scmp.ne.s32.totalorder %s245_s9, %s874_s22  ;;  %p880_p12 = scmp.lt.s32.totalorder %s1066_s12, %s874_s22 }
 0x13d   :  { %p881_p13 = por %p880_p12, %p879_p10 }
 0x13f   :  { %p882_p0 = pnand %p881_p13, %p875_p9 }
 0x141   :  { %885 = shalt.err (!%p882_p0)  }
 0x142   :  { %247 = dma.hbm_to_vmem [thread:$0]  %s234_s20, 16, %s245_s9, [#allocation2 + $0xd] }
 0x143   :  { %s502_s23 = sshll.u32 %s1258_s11, 4  ;;  %s1008_s25 = smov [#allocation5 + $0xf]  }
 0x144   :  { %s278_s29 = sshll.u32 %s1008_s25, 4  ;;  %s251_s28 = scalar_lea.hbm %s1325_s1, %s502_s23  ;;  %s1278_s29 = int_to_ptr.vmem [resolvable:$true] %s278_s29 }
 0x145   :  { %s886_s24 = scalar_lea.hbm %s251_s28, 16  ;;  %p889_p2 = scmp.lt.u32.totalorder %s251_s28, %s1325_s1 }
 0x146   :  { %p887_p1 = scmp.ne.s32.totalorder %s251_s28, %s886_s24  ;;  %p890_p3 = scmp.lt.u32.totalorder %s1057_s8, %s886_s24 }
 0x147   :  { %p892_p5 = scmp.lt.u32.totalorder %s886_s24, %s251_s28 }
 0x148   :  { %p891_p4 = por %p890_p3, %p889_p2 }
 0x14a   :  { %p893_p6 = por %p892_p5, %p891_p4 }
 0x14c   :  { %p894_p7 = pnand %p893_p6, %p887_p1 }
 0x14e   :  { %897 = shalt.err (!%p894_p7)  }
 0x14f   :  { %s898_s6 = scalar_lea.vmem %s1263_s13, 16  ;;  %p903_p9 = scmp.lt.s32.totalorder %s1263_s13, %s1040_s21 }
 0x150   :  { %p899_p8 = scmp.ne.s32.totalorder %s1263_s13, %s898_s6  ;;  %p904_p10 = scmp.lt.s32.totalorder %s1066_s12, %s898_s6 }
 0x152   :  { %p905_p12 = por %p904_p10, %p903_p9 }
 0x154   :  { %p906_p13 = pnand %p905_p12, %p899_p8 }
 0x156   :  { %909 = shalt.err (!%p906_p13)  }
 0x157   :  { %264 = dma.hbm_to_vmem [thread:$0]  %s251_s28, 16, %s1263_s13, [#allocation2 + $0xe] }
 0x158   :  { %s504_s7 = sshll.u32 %s1260_s10, 4 }
 0x159   :  { %s268_s9 = scalar_lea.hbm %s1325_s1, %s504_s7 }
 0x15a   :  { %s910_s11 = scalar_lea.hbm %s268_s9, 16  ;;  %p913_p1 = scmp.lt.u32.totalorder %s268_s9, %s1325_s1 }
 0x15b   :  { %p911_p0 = scmp.ne.s32.totalorder %s268_s9, %s910_s11  ;;  %p914_p2 = scmp.lt.u32.totalorder %s1057_s8, %s910_s11 }
 0x15c   :  { %p916_p4 = scmp.lt.u32.totalorder %s910_s11, %s268_s9 }
 0x15d   :  { %p915_p3 = por %p914_p2, %p913_p1 }
 0x15f   :  { %p917_p5 = por %p916_p4, %p915_p3 }
 0x161   :  { %p918_p6 = pnand %p917_p5, %p911_p0 }
 0x163   :  { %921 = shalt.err (!%p918_p6)  }
 0x164   :  { %s922_s13 = scalar_lea.vmem %s1278_s29, 16  ;;  %p927_p8 = scmp.lt.s32.totalorder %s1278_s29, %s1040_s21 }
 0x165   :  { %p923_p7 = scmp.ne.s32.totalorder %s1278_s29, %s922_s13  ;;  %p928_p9 = scmp.lt.s32.totalorder %s1066_s12, %s922_s13 }
 0x167   :  { %p929_p10 = por %p928_p9, %p927_p8 }
 0x169   :  { %p930_p12 = pnand %p929_p10, %p923_p7 }
 0x16b   :  { %933 = shalt.err (!%p930_p12)  }
 0x16c   :  { %281 = dma.hbm_to_vmem [thread:$0]  %s268_s9, 16, %s1278_s29, [#allocation2 + $0xf] }
 0x16d   :  { %958 = dma.done.wait [#allocation2], 16 }
 0x16e   :  { %959 = vsyncadd [#allocation2], 4294967280 }
 0x16f   :  { %960 = dma.done.wait [#allocation2 + $0x1], 16 }
 0x170   :  { %961 = vsyncadd [#allocation2 + $0x1], 4294967280 }
 0x171   :  { %962 = dma.done.wait [#allocation2 + $0x2], 16 }
 0x172   :  { %963 = vsyncadd [#allocation2 + $0x2], 4294967280 }
 0x173   :  { %964 = dma.done.wait [#allocation2 + $0x3], 16 }
 0x174   :  { %965 = vsyncadd [#allocation2 + $0x3], 4294967280 }
 0x175   :  { %966 = dma.done.wait [#allocation2 + $0x4], 16 }
 0x176   :  { %967 = vsyncadd [#allocation2 + $0x4], 4294967280 }
 0x177   :  { %968 = dma.done.wait [#allocation2 + $0x5], 16 }
 0x178   :  { %969 = vsyncadd [#allocation2 + $0x5], 4294967280 }
 0x179   :  { %970 = dma.done.wait [#allocation2 + $0x6], 16 }
 0x17a   :  { %971 = vsyncadd [#allocation2 + $0x6], 4294967280 }
 0x17b   :  { %972 = dma.done.wait [#allocation2 + $0x7], 16 }
 0x17c   :  { %973 = vsyncadd [#allocation2 + $0x7], 4294967280 }
 0x17d   :  { %974 = dma.done.wait [#allocation2 + $0x8], 16 }
 0x17e   :  { %975 = vsyncadd [#allocation2 + $0x8], 4294967280 }
 0x17f   :  { %976 = dma.done.wait [#allocation2 + $0x9], 16 }
 0x180   :  { %977 = vsyncadd [#allocation2 + $0x9], 4294967280 }
 0x181   :  { %978 = dma.done.wait [#allocation2 + $0xa], 16 }
 0x182   :  { %979 = vsyncadd [#allocation2 + $0xa], 4294967280 }
 0x183   :  { %980 = dma.done.wait [#allocation2 + $0xb], 16 }
 0x184   :  { %981 = vsyncadd [#allocation2 + $0xb], 4294967280 }
 0x185   :  { %982 = dma.done.wait [#allocation2 + $0xc], 16 }
 0x186   :  { %983 = vsyncadd [#allocation2 + $0xc], 4294967280 }
 0x187   :  { %984 = dma.done.wait [#allocation2 + $0xd], 16 }
 0x188   :  { %985 = vsyncadd [#allocation2 + $0xd], 4294967280 }
 0x189   :  { %986 = dma.done.wait [#allocation2 + $0xe], 16 }
 0x18a   :  { %987 = vsyncadd [#allocation2 + $0xe], 4294967280 }
 0x18b   :  { %988 = dma.done.wait [#allocation2 + $0xf], 16 }
 0x18c   :  { %989 = vsyncadd [#allocation2 + $0xf], 4294967280  ;;  %p935_p13 = scmp.ne.s32.totalorder %s1040_s21, %s1066_s12  ;;  %p940_p0 = scmp.lt.s32.totalorder %s1066_s12, %s1066_s12 }
 0x18e   :  { %p941_p1 = por %p940_p0, %p567_p11 }
 0x190   :  { %p942_p2 = pnand %p941_p1, %p935_p13 }
 0x192   :  { %945 = shalt.err (!%p942_p2)
}
 0x193   :  { %s946_s10 = scalar_lea.hbm %s1326_s2, 256 }
 0x194   :  { %p947_p3 = scmp.ne.s32.totalorder %s1326_s2, %s946_s10  ;;  %p950_p4 = scmp.lt.u32.totalorder %s946_s10, %s1326_s2 }
 0x196   :  { %p952_p5 = pnand %p950_p4, %p947_p3 }
 0x198   :  { %955 = shalt.err (!%p952_p5)
}
 0x199   :  { %s1009_s18 = smov 128   ;;  %s1010_s12 = smov 8  }
 0x19a   :  { %326 = dma.vmem_to_hbm [thread:$0]  %s1040_s21, 256, %s1326_s2, [#allocation6], %s1009_s18, %s1009_s18, %s1010_s12  }
 0x19b   :  { %990 = dma.done.wait [#allocation6], 256  }
 0x19c   :  { %991 = vsyncadd [#allocation6], 4294967040 }
 0x19d   :  { %330 = vsyncpa [#allocation6], 1 }
 0x19e   :  { %331 = vsyncmov [#allocation2] }
 0x1a1   :  { %s332_s23 = vpop.sfrf %331 }
 0x1a2   :  { %p505_p11 = scmp.ne.s32.totalorder %s332_s23, 0 }
 0x1a4   :  { %336 = shalt.err (%p505_p11)  }
 0x1a5   :  { %338 = vsyncmov [#allocation2 + $0x1] }
 0x1a8   :  { %s339_s25 = vpop.sfrf %338 }
 0x1a9   :  { %p506_p6 = scmp.ne.s32.totalorder %s339_s25, 0 }
 0x1ab   :  { %343 = shalt.err (%p506_p6)  }
 0x1ac   :  { %345 = vsyncmov [#allocation2 + $0x2] }
 0x1af   :  { %s346_s29 = vpop.sfrf %345 }
 0x1b0   :  { %p507_p7 = scmp.ne.s32.totalorder %s346_s29, 0 }
 0x1b2   :  { %350 = shalt.err (%p507_p7)  }
 0x1b3   :  { %352 = vsyncmov [#allocation2 + $0x3] }
 0x1b6   :  { %s353_s30 = vpop.sfrf %352 }
 0x1b7   :  { %p508_p8 = scmp.ne.s32.totalorder %s353_s30, 0 }
 0x1b9   :  { %357 = shalt.err (%p508_p8)  }
 0x1ba   :  { %359 = vsyncmov [#allocation2 + $0x4] }
 0x1bd   :  { %s360_s2 = vpop.sfrf %359 }
 0x1be   :  { %p509_p9 = scmp.ne.s32.totalorder %s360_s2, 0 }
 0x1c0   :  { %364 = shalt.err (%p509_p9)  }
 0x1c1   :  { %366 = vsyncmov [#allocation2 + $0x5] }
 0x1c4   :  { %s367_s21 = vpop.sfrf %366 }
 0x1c5   :  { %p510_p10 = scmp.ne.s32.totalorder %s367_s21, 0 }
 0x1c7   :  { %371 = shalt.err (%p510_p10)  }
 0x1c8   :  { %373 = vsyncmov [#allocation2 + $0x6] }
 0x1cb   :  { %s374_s26 = vpop.sfrf %373 }
 0x1cc   :  { %p511_p12 = scmp.ne.s32.totalorder %s374_s26, 0 }
 0x1ce   :  { %378 = shalt.err (%p511_p12)  }
 0x1cf   :  { %380 = vsyncmov [#allocation2 + $0x7] }
 0x1d2   :  { %s381_s28 = vpop.sfrf %380 }
 0x1d3   :  { %p512_p13 = scmp.ne.s32.totalorder %s381_s28, 0 }
 0x1d5   :  { %385 = shalt.err (%p512_p13)  }
 0x1d6   :  { %387 = vsyncmov [#allocation2 + $0x8] }
 0x1d9   :  { %s388_s24 = vpop.sfrf %387 }
 0x1da   :  { %p513_p0 = scmp.ne.s32.totalorder %s388_s24, 0 }
 0x1dc   :  { %392 = shalt.err (%p513_p0)  }
 0x1dd   :  { %394 = vsyncmov [#allocation2 + $0x9] }
 0x1e0   :  { %s395_s3 = vpop.sfrf %394 }
 0x1e1   :  { %p514_p1 = scmp.ne.s32.totalorder %s395_s3, 0 }
 0x1e3   :  { %399 = shalt.err (%p514_p1)  }
 0x1e4   :  { %401 = vsyncmov [#allocation2 + $0xa] }
 0x1e7   :  { %s402_s4 = vpop.sfrf %401 }
 0x1e8   :  { %p515_p2 = scmp.ne.s32.totalorder %s402_s4, 0 }
 0x1ea   :  { %406 = shalt.err (%p515_p2)  }
 0x1eb   :  { %408 = vsyncmov [#allocation2 + $0xb] }
 0x1ee   :  { %s409_s6 = vpop.sfrf %408 }
 0x1ef   :  { %p516_p3 = scmp.ne.s32.totalorder %s409_s6, 0 }
 0x1f1   :  { %413 = shalt.err (%p516_p3)  }
 0x1f2   :  { %415 = vsyncmov [#allocation2 + $0xc] }
 0x1f5   :  { %s416_s7 = vpop.sfrf %415 }
 0x1f6   :  { %p517_p4 = scmp.ne.s32.totalorder %s416_s7, 0 }
 0x1f8   :  { %420 = shalt.err (%p517_p4)  }
 0x1f9   :  { %422 = vsyncmov [#allocation2 + $0xd] }
 0x1fc   :  { %s423_s5 = vpop.sfrf %422 }
 0x1fd   :  { %p518_p5 = scmp.ne.s32.totalorder %s423_s5, 0 }
 0x1ff   :  { %427 = shalt.err (%p518_p5)  }
 0x200   :  { %429 = vsyncmov [#allocation2 + $0xe] }
 0x203   :  { %s430_s27 = vpop.sfrf %429 }
 0x204   :  { %p519_p11 = scmp.ne.s32.totalorder %s430_s27, 0 }
 0x206   :  { %434 = shalt.err (%p519_p11)  }
 0x207   :  { %436 = vsyncmov [#allocation2 + $0xf] }
 0x20a   :  { %s437_s9 = vpop.sfrf %436 }
 0x20b   :  { %p520_p6 = scmp.ne.s32.totalorder %s437_s9, 0 }
 0x20d   :  { %441 = shalt.err (%p520_p6)  }

</bundles_post_ra>
